<compile_context>
chip_gen: v7x
topology: tpu7x:2x2x1
jax: 0.10.0
libtpu: 0.0.40
codegen_flags: <defaults>
</compile_context>

<pallas_src>
import functools

import jax
import jax.numpy as jnp
import numpy as np
from jax.experimental import pallas as pl
from jax.experimental.pallas import tpu as pltpu

# ---- cfg choices (from graphgps cfg) ---------------------------------------
NU = 1                      # DRew delay parameter nu
AGG_WEIGHTS_USE = True      # cfg.agg_weights.use
CONVEX_COMBO = True         # cfg.agg_weights.convex_combo
L2NORM = True               # cfg.gnn.l2norm


def _round_up(x, m):
    return ((x + m - 1) // m) * m


def _pick_tile(n_pad, requested):
    """Largest power-of-two multiple of 128 dividing n_pad, capped at `requested` (>=128)."""
    t = 128
    while t * 2 <= min(requested, n_pad) and n_pad % (t * 2) == 0:
        t *= 2
    return t


def _vmem_limit_bytes(tile_rows, tile_cols, d_pad):
    a_blk = tile_rows * tile_cols * 2      # bf16
    xh_blk = tile_cols * d_pad * 2         # bf16
    w_blk = d_pad * d_pad * 2              # bf16
    b_blk = 8 * d_pad * 4
    xt_blk = tile_rows * d_pad * 4
    out_blk = tile_rows * d_pad * 4
    acc_blk = tile_rows * d_pad * 4
    est = 2 * (a_blk + xh_blk + w_blk + b_blk + xt_blk + out_blk) + acc_blk
    return int(min(max(2 * est + (2 << 20), 16 << 20), 64 << 20))


# ---------------------------------------------------------------------------
# Pallas kernel: one DRew layer.
#   grid = (row_tiles, K_used, col_chunks)
#         rows "parallel" (megacore), k and column-chunk reductions "arbitrary".
#   scalar prefetch : hop_idx (K_used,) int32  -> A-stack index per used hop
#                     delay_idx (K_used,) int32 -> history index per used hop
#   SMEM inputs     : alpha_eff (K_used,) f32, alpha_sum (1,) f32
#   VMEM inputs     : A_stack (L,Np,Np) bf16, hist (L,Np,Dp) bf16,
#                     W (Dp,Dp) bf16, b (1,Dp) f32, x_t (Np,Dp) f32
#   output          : x_{t+1} (Np,Dp) f32
#   scratch         : f32 accumulator (tile_rows, Dp)
# ---------------------------------------------------------------------------
def drew_layer_kernel(hop_ref, delay_ref, alpha_ref, alpha_sum_ref,
                      a_ref, xh_ref, w_ref, b_ref, xt_ref,
                      out_ref, acc_ref):
    del hop_ref, delay_ref                     # only used inside the index_maps
    k = pl.program_id(1)
    c = pl.program_id(2)

    @pl.when(jnp.logical_and(k == 0, c == 0))
    def _init():
        acc_ref[...] = jnp.zeros_like(acc_ref)

    # acc += alpha_k * (A_k[rows, cols] @ x_delayed[cols, :])   (bf16 MXU, f32 acc)
    ax = jnp.dot(a_ref[...], xh_ref[...], preferred_element_type=jnp.float32)
    acc_ref[...] = acc_ref[...] + alpha_ref[k] * ax

    @pl.when(jnp.logical_and(k == pl.num_programs(1) - 1,
                             c == pl.num_programs(2) - 1))
    def _finalize():
        # Shared-weight matmul + bias hoisted out of the k loop (bf16 MXU, f32 acc).
        h = jnp.dot(acc_ref[...].astype(jnp.bfloat16), w_ref[...],
                    preferred_element_type=jnp.float32)
        h = h + alpha_sum_ref[0] * b_ref[...]
        y = xt_ref[...] + jnp.maximum(h, 0.0)          # residual + ReLU
        if L2NORM:
            ss = jnp.sum(y * y, axis=-1, keepdims=True)
            # rsqrt(max(ss,1e-24)) == F.normalize(p=2) except for all-zero rows
            # (both return ~0 there); uses the EUP instead of sqrt + divide.
            y = y * jax.lax.rsqrt(jnp.maximum(ss, 1e-24))
        out_ref[...] = y.astype(out_ref.dtype)


def _drew_layer_pallas(hop_idx, delay_idx, alpha_eff, alpha_sum,
                       a_p, hist, w_p, b_p, x_t,
                       *, k_used, tile_rows, tile_cols):
    n_pad, d_pad = x_t.shape
    grid = (n_pad // tile_rows, k_used, n_pad // tile_cols)
    return pl.pallas_call(
        drew_layer_kernel,
        out_shape=jax.ShapeDtypeStruct((n_pad, d_pad), jnp.float32),
        grid_spec=pltpu.PrefetchScalarGridSpec(
            num_scalar_prefetch=2,           # hop_idx, delay_idx -> SMEM, seen by index_maps
            grid=grid,
            in_specs=[
                pl.BlockSpec(memory_space=pltpu.MemorySpace.SMEM),          # alpha_eff (K_used,)
                pl.BlockSpec(memory_space=pltpu.MemorySpace.SMEM),          # alpha_sum (1,)
                pl.BlockSpec((pl.Squeezed(), tile_rows, tile_cols),         # A_k tile (bf16)
                             lambda i, k, c, hop, dly: (hop[k], i, c)),
                pl.BlockSpec((pl.Squeezed(), tile_cols, d_pad),             # delayed x chunk (bf16)
                             lambda i, k, c, hop, dly: (dly[k], c, 0)),
                pl.BlockSpec((d_pad, d_pad), lambda i, k, c, hop, dly: (0, 0)),   # W (bf16)
                pl.BlockSpec((1, d_pad), lambda i, k, c, hop, dly: (0, 0)),       # b (f32)
                pl.BlockSpec((tile_rows, d_pad), lambda i, k, c, hop, dly: (i, 0)),  # x_t tile
            ],
            out_specs=pl.BlockSpec((tile_rows, d_pad),
                                   lambda i, k, c, hop, dly: (i, 0)),
            scratch_shapes=[pltpu.VMEM((tile_rows, d_pad), jnp.float32)],
        ),
        compiler_params=pltpu.CompilerParams(
            dimension_semantics=("parallel", "arbitrary", "arbitrary"),
            vmem_limit_bytes=_vmem_limit_bytes(tile_rows, tile_cols, d_pad)),
    )(hop_idx, delay_idx, alpha_eff, alpha_sum, a_p, hist, w_p, b_p, x_t)


# ---------------------------------------------------------------------------
# Stage forward (glue in plain JAX, hot path in the Pallas kernel above).
# ---------------------------------------------------------------------------
def _layer_alpha_full(params, t):
    K = t + 1
    if AGG_WEIGHTS_USE:
        alpha = jax.nn.softmax(params["alpha"][t])
    else:
        alpha = jnp.full((K,), 1.0 / K, jnp.float32)    # softmax of ones
    if not CONVEX_COMBO:
        alpha = alpha * K
    return alpha


@functools.partial(jax.jit, static_argnames=("has_edges", "tile_rows", "tile_cols"))
def drew_share_gnn_forward(x, a_norm_stack, params, *, has_edges,
                           tile_rows=256, tile_cols=512):
    """
    x:            (N, D) node features (f32)
    a_norm_stack: (L, N, N) GCN-normalized exact-k-hop adjacencies, k = 1..L (f32)
    has_edges:    static tuple of python bools, True if the k-hop edge set is non-empty
    params:       dict with 'W'[t] (D,D), 'b'[t] (D,), 'alpha'[t] (t+1,)
    """
    N, D = x.shape
    L = a_norm_stack.shape[0]
    num_layers = len(params["W"])

    n_pad = _round_up(N, 128)              # row / contraction padding
    d_pad = _round_up(D, 128)              # lane-dense feature axis
    tr = _pick_tile(n_pad, tile_rows)      # row tile   (>=128, divides n_pad)
    tc = _pick_tile(n_pad, tile_cols)      # contraction chunk (>=128, divides n_pad)

    # A stack and history are the big HBM streams -> bf16 (f32 MXU accumulate).
    a_p = jnp.zeros((L, n_pad, n_pad), jnp.bfloat16)
    a_p = a_p.at[:, :N, :N].set(a_norm_stack.astype(jnp.bfloat16))
    x_p = jnp.zeros((n_pad, d_pad), jnp.float32).at[:N, :D].set(x)
    hist = jnp.zeros((num_layers, n_pad, d_pad), jnp.bfloat16)

    for t in range(num_layers):
        hist = hist.at[t].set(x_p.astype(jnp.bfloat16))
        # Static compaction of empty k-hop neighbourhoods (mirrors A(k).shape[1] > 0).
        used = [k for k in range(1, t + 2) if bool(has_edges[k - 1])]
        if not used:                                    # no edges at all this layer
            y = x_p                                     # acc == 0  ->  x + relu(0)
            if L2NORM:
                ss = jnp.sum(y * y, axis=-1, keepdims=True)
                y = y * jax.lax.rsqrt(jnp.maximum(ss, 1e-24))
            x_p = y
            continue

        alpha_full = _layer_alpha_full(params, t)                        # softmax over ALL hops
        used0 = jnp.asarray([k - 1 for k in used], dtype=jnp.int32)
        alpha_eff = alpha_full[used0]                                    # (K_used,)
        alpha_sum = jnp.sum(alpha_eff).reshape(1)                        # (1,)
        hop_idx = used0                                                  # A-stack index per hop
        delay_idx = jnp.asarray([t - max(k - NU, 0) for k in used],
                                dtype=jnp.int32)                         # history index per hop
        w_p = jnp.zeros((d_pad, d_pad), jnp.bfloat16).at[:D, :D].set(
            params["W"][t].astype(jnp.bfloat16))
        b_p = jnp.zeros((1, d_pad), jnp.float32).at[0, :D].set(params["b"][t])
        x_p = _drew_layer_pallas(hop_idx, delay_idx, alpha_eff, alpha_sum,
                                 a_p, hist, w_p, b_p, x_p,
                                 k_used=len(used), tile_rows=tr, tile_cols=tc)
    return x_p[:N, :D]


# ---------------------------------------------------------------------------
# Pure-JAX reference (mirrors the original per-k GCNConv structure; applies the
# same bf16 quantization of the matmul operands as the kernel so the remaining
# difference is f32 summation order + the rsqrt-vs-sqrt/divide norm epsilon).
# ---------------------------------------------------------------------------
def drew_share_gnn_ref(x, a_norm_stack, has_edges, params):
    num_layers = len(params["W"])
    a_bf16 = a_norm_stack.astype(jnp.bfloat16)
    x_hist = []
    for t in range(num_layers):
        x_hist.append(x)
        K = t + 1
        alpha = _layer_alpha_full(params, t)
        W_bf16 = params["W"][t].astype(jnp.bfloat16)
        b = params["b"][t]
        acc = jnp.zeros_like(x)
        for idx, k in enumerate(range(1, K + 1)):
            if not has_edges[k - 1]:
                continue
            delay = max(k - NU, 0)
            x_del = x_hist[t - delay].astype(jnp.bfloat16)
            ax = jnp.dot(a_bf16[k - 1], x_del, preferred_element_type=jnp.float32)
            h = jnp.dot(ax.astype(jnp.bfloat16), W_bf16,
                        preferred_element_type=jnp.float32) + b[None, :]
            acc = acc + alpha[idx] * h
        y = x_hist[t] + jax.nn.relu(acc)
        if L2NORM:
            nrm = jnp.sqrt(jnp.sum(y * y, axis=-1, keepdims=True))
            y = y / jnp.maximum(nrm, 1e-12)
        x = y
    return x


# ---------------------------------------------------------------------------
# Graph / parameter construction (deterministic, in-script).
# ---------------------------------------------------------------------------
def build_hop_adjacencies(key, n, num_layers, p=0.08):
    """Random undirected graph -> exact-k-hop dense adjacencies, GCN normalized."""
    u = jax.random.uniform(key, (n, n))
    upper = jnp.triu((u < p).astype(jnp.float32), k=1)
    a1 = upper + upper.T                                     # symmetric, no self loops
    a_bool = a1 > 0
    eye = jnp.eye(n, dtype=bool)

    hop_adjs = []
    has_edges = []
    reach_prev = eye                                         # reachable within <k hops
    cur = reach_prev
    step = a_bool | eye
    for _ in range(num_layers):
        cur = (cur.astype(jnp.float32) @ step.astype(jnp.float32)) > 0  # within <=k hops
        exact_k = (cur & ~reach_prev).astype(jnp.float32)               # exactly k hops
        reach_prev = reach_prev | cur
        has_edges.append((exact_k.sum() > 0).astype(jnp.float32))
        # GCN normalization with self loops: D^{-1/2} (A_k + I) D^{-1/2}
        a_hat = exact_k + jnp.eye(n, dtype=jnp.float32)
        d_inv_sqrt = 1.0 / jnp.sqrt(a_hat.sum(-1))
        hop_adjs.append(d_inv_sqrt[:, None] * a_hat * d_inv_sqrt[None, :])
    return jnp.stack(hop_adjs, axis=0), jnp.stack(has_edges, axis=0)


def init_params(key, dim, num_layers):
    # Weight sharing: ONE conv weight per layer t (shared across k-neighbourhoods),
    # plus per-layer aggregation weights alpha_t of length len(k_neighbourhoods(t)) = t+1.
    params = {"W": [], "b": [], "alpha": []}
    for t in range(num_layers):
        key, kw, kb, ka = jax.random.split(key, 4)
        params["W"].append(jax.random.normal(kw, (dim, dim), jnp.float32) / jnp.sqrt(dim))
        params["b"].append(0.01 * jax.random.normal(kb, (dim,), jnp.float32))
        params["alpha"].append(0.1 * jax.random.normal(ka, (t + 1,), jnp.float32))
    return params


if __name__ == "__main__":
    N = 100         # nodes (padded to 128 rows internally)
    D = 64          # feature dim (dim_in == dim_out; padded to 128 lanes internally)
    NUM_LAYERS = 3

    key = jax.random.PRNGKey(0)
    k_x, k_g, k_p = jax.random.split(key, 3)

    x0 = jax.random.normal(k_x, (N, D), jnp.float32)
    a_norm_stack, has_edges_arr = build_hop_adjacencies(k_g, N, NUM_LAYERS)
    has_edges = tuple(bool(v) for v in np.asarray(has_edges_arr))   # static (host-side) like PyTorch
    params = init_params(k_p, D, NUM_LAYERS)

    out = drew_share_gnn_forward(x0, a_norm_stack, params, has_edges=has_edges,
                                 tile_rows=256, tile_cols=512)
    out = jax.block_until_ready(out)

    ref = drew_share_gnn_ref(x0, a_norm_stack, has_edges, params)
    ref = jax.block_until_ready(ref)

    # Both paths quantize the matmul operands to bf16 and accumulate in f32; remaining
    # differences are f32 summation order, quantize-then-sum vs sum-then-quantize of
    # the per-hop aggregate, and rsqrt(max(ss,1e-24)) vs divide-by-max(sqrt,1e-12)
    # (identical except for all-zero rows), hence the few-1e-3 tolerance.
    np.testing.assert_allclose(np.asarray(out), np.asarray(ref), rtol=5e-3, atol=5e-3)

    print("KERNEL_OK")
</pallas_src>

<mosaic_0001>
module attributes {stable_mosaic.version = 11 : i64} {
  func.func @drew_layer_kernel(%arg0: i32, %arg1: i32, %arg2: i32, %arg3: memref<1xi32, #tpu.memory_space<smem>>, %arg4: memref<1xi32, #tpu.memory_space<smem>>, %arg5: memref<1xf32, #tpu.memory_space<smem>>, %arg6: memref<1xf32, #tpu.memory_space<smem>>, %arg7: memref<1x128x128xbf16, #tpu.memory_space<vmem>>, %arg8: memref<1x128x128xbf16, #tpu.memory_space<vmem>>, %arg9: memref<128x128xbf16, #tpu.memory_space<vmem>>, %arg10: memref<1x128xf32, #tpu.memory_space<vmem>>, %arg11: memref<128x128xf32, #tpu.memory_space<vmem>>, %arg12: memref<128x128xf32, #tpu.memory_space<vmem>>, %arg13: memref<128x128xf32, #tpu.memory_space<vmem>>) attributes {dimension_semantics = [#tpu.dimension_semantics<parallel>, #tpu.dimension_semantics<arbitrary>, #tpu.dimension_semantics<arbitrary>], iteration_bounds = array<i64: 1, 1, 1>, scalar_prefetch = 2 : i64, scratch_operands = 1 : i64, tpu.core_type = #tpu.core_type<tc>, window_params = [{transform_indices = @transform_0, window_bounds = array<i64: 1>}, {transform_indices = @transform_1, window_bounds = array<i64: 1>}, {transform_indices = @transform_2, window_bounds = array<i64: 1, 128, 128>}, {transform_indices = @transform_3, window_bounds = array<i64: 1, 128, 128>}, {pipeline_mode = #tpu.pipeline_mode<synchronous>, transform_indices = @transform_4, window_bounds = array<i64: 128, 128>}, {pipeline_mode = #tpu.pipeline_mode<synchronous>, transform_indices = @transform_5, window_bounds = array<i64: 1, 128>}, {transform_indices = @transform_6, window_bounds = array<i64: 128, 128>}, {transform_indices = @transform_7, window_bounds = array<i64: 128, 128>}]} {
    %c0_i32 = arith.constant 0 : i32
    %0 = arith.cmpi eq, %arg1, %c0_i32 : i32
    %c0_i32_0 = arith.constant 0 : i32
    %1 = arith.cmpi eq, %arg2, %c0_i32_0 : i32
    %2 = arith.andi %0, %1 : i1
    %3 = arith.extui %2 : i1 to i32
    %c0_i32_1 = arith.constant 0 : i32
    %4 = arith.cmpi ne, %3, %c0_i32_1 : i32
    scf.if %4 {
      %cst_14 = arith.constant 0.000000e+00 : f32
      %22 = vector.broadcast %cst_14 : f32 to vector<128x128xf32>
      %c0_15 = arith.constant 0 : index
      %c0_16 = arith.constant 0 : index
      %23 = vector.load %arg13[%c0_15, %c0_16] : memref<128x128xf32, #tpu.memory_space<vmem>>, vector<128x128xf32>
      tpu.vector_store %arg13[%c0_15, %c0_16], %22 {strides = array<i32>} : memref<128x128xf32, #tpu.memory_space<vmem>>, vector<128x128xf32>,
    } else {
    }
    %c0 = arith.constant 0 : index
    %c0_2 = arith.constant 0 : index
    %c0_3 = arith.constant 0 : index
    %5 = vector.load %arg7[%c0, %c0_2, %c0_3] : memref<1x128x128xbf16, #tpu.memory_space<vmem>>, vector<1x128x128xbf16>
    %6 = vector.shape_cast %5 : vector<1x128x128xbf16> to vector<128x128xbf16>
    %c0_4 = arith.constant 0 : index
    %c0_5 = arith.constant 0 : index
    %c0_6 = arith.constant 0 : index
    %7 = vector.load %arg8[%c0_4, %c0_5, %c0_6] : memref<1x128x128xbf16, #tpu.memory_space<vmem>>, vector<1x128x128xbf16>
    %8 = vector.shape_cast %7 : vector<1x128x128xbf16> to vector<128x128xbf16>
    %cst = arith.constant dense<0.000000e+00> : vector<128x128xf32>
    %9 = tpu.matmul %6, %8, %cst {dimension_numbers = #tpu.dot_dimension_numbers<[1], [0], [0], [1], [0, 0, 1, 1], [], []>} : vector<128x128xbf16>, vector<128x128xbf16>, vector<128x128xf32> -> vector<128x128xf32>
    %c0_7 = arith.constant 0 : index
    %c0_8 = arith.constant 0 : index
    %10 = vector.load %arg13[%c0_7, %c0_8] : memref<128x128xf32, #tpu.memory_space<vmem>>, vector<128x128xf32>
    %11 = arith.index_cast %arg1 : i32 to index
    %12 = memref.load %arg5[%11] : memref<1xf32, #tpu.memory_space<smem>>
    %13 = vector.broadcast %12 : f32 to vector<128x128xf32>
    %14 = arith.mulf %13, %9 : vector<128x128xf32>
    %15 = arith.addf %10, %14 : vector<128x128xf32>
    %c0_9 = arith.constant 0 : index
    %c0_10 = arith.constant 0 : index
    %16 = vector.load %arg13[%c0_9, %c0_10] : memref<128x128xf32, #tpu.memory_space<vmem>>, vector<128x128xf32>
    tpu.vector_store %arg13[%c0_9, %c0_10], %15 {strides = array<i32>} : memref<128x128xf32, #tpu.memory_space<vmem>>, vector<128x128xf32>,
    %c0_i32_11 = arith.constant 0 : i32
    %17 = arith.cmpi eq, %arg1, %c0_i32_11 : i32
    %c0_i32_12 = arith.constant 0 : i32
    %18 = arith.cmpi eq, %arg2, %c0_i32_12 : i32
    %19 = arith.andi %17, %18 : i1
    %20 = arith.extui %19 : i1 to i32
    %c0_i32_13 = arith.constant 0 : i32
    %21 = arith.cmpi ne, %20, %c0_i32_13 : i32
    scf.if %21 {
      %c0_14 = arith.constant 0 : index
      %c0_15 = arith.constant 0 : index
      %22 = vector.load %arg13[%c0_14, %c0_15] : memref<128x128xf32, #tpu.memory_space<vmem>>, vector<128x128xf32>
      %23 = arith.truncf %22 : vector<128x128xf32> to vector<128x128xbf16>
      %c0_16 = arith.constant 0 : index
      %c0_17 = arith.constant 0 : index
      %24 = vector.load %arg9[%c0_16, %c0_17] : memref<128x128xbf16, #tpu.memory_space<vmem>>, vector<128x128xbf16>
      %cst_18 = arith.constant dense<0.000000e+00> : vector<128x128xf32>
      %25 = tpu.matmul %23, %24, %cst_18 {dimension_numbers = #tpu.dot_dimension_numbers<[1], [0], [0], [1], [0, 0, 1, 1], [], []>} : vector<128x128xbf16>, vector<128x128xbf16>, vector<128x128xf32> -> vector<128x128xf32>
      %c0_19 = arith.constant 0 : index
      %26 = memref.load %arg6[%c0_19] : memref<1xf32, #tpu.memory_space<smem>>
      %c0_20 = arith.constant 0 : index
      %c0_21 = arith.constant 0 : index
      %27 = vector.load %arg10[%c0_20, %c0_21] : memref<1x128xf32, #tpu.memory_space<vmem>>, vector<1x128xf32>
      %28 = vector.broadcast %26 : f32 to vector<1x128xf32>
      %29 = arith.mulf %28, %27 : vector<1x128xf32>
      %30 = vector.broadcast %29 : vector<1x128xf32> to vector<128x128xf32>
      %31 = arith.addf %25, %30 : vector<128x128xf32>
      %c0_22 = arith.constant 0 : index
      %c0_23 = arith.constant 0 : index
      %32 = vector.load %arg11[%c0_22, %c0_23] : memref<128x128xf32, #tpu.memory_space<vmem>>, vector<128x128xf32>
      %cst_24 = arith.constant 0.000000e+00 : f32
      %33 = vector.broadcast %cst_24 : f32 to vector<128x128xf32>
      %34 = arith.maximumf %31, %33 : vector<128x128xf32>
      %35 = arith.addf %32, %34 : vector<128x128xf32>
      %36 = arith.mulf %35, %35 : vector<128x128xf32>
      %cst_25 = arith.constant dense<0.000000e+00> : vector<128xf32>
      %37 = vector.multi_reduction <add>, %36, %cst_25 [1] : vector<128x128xf32> to vector<128xf32>
      %38 = vector.shape_cast %37 : vector<128xf32> to vector<128x1xf32>
      %cst_26 = arith.constant 1.000000e-24 : f32
      %39 = vector.broadcast %cst_26 : f32 to vector<128x1xf32>
      %40 = arith.maximumf %38, %39 : vector<128x1xf32>
      %41 = math.rsqrt %40 : vector<128x1xf32>
      %42 = vector.broadcast %41 : vector<128x1xf32> to vector<128x128xf32>
      %43 = arith.mulf %35, %42 : vector<128x128xf32>
      %c0_27 = arith.constant 0 : index
      %c0_28 = arith.constant 0 : index
      %44 = vector.load %arg12[%c0_27, %c0_28] : memref<128x128xf32, #tpu.memory_space<vmem>>, vector<128x128xf32>
      tpu.vector_store %arg12[%c0_27, %c0_28], %43 {strides = array<i32>} : memref<128x128xf32, #tpu.memory_space<vmem>>, vector<128x128xf32>,
    } else {
    }
    return
  }
  func.func @transform_0(%arg0: i32, %arg1: i32, %arg2: i32, %arg3: memref<1xi32, #tpu.memory_space<smem>>, %arg4: memref<1xi32, #tpu.memory_space<smem>>) -> i32 {
    %c0_i32 = arith.constant 0 : i32
    %c0_i32_0 = arith.constant 0 : i32
    return %c0_i32 : i32
  }
  func.func @transform_1(%arg0: i32, %arg1: i32, %arg2: i32, %arg3: memref<1xi32, #tpu.memory_space<smem>>, %arg4: memref<1xi32, #tpu.memory_space<smem>>) -> i32 {
    %c0_i32 = arith.constant 0 : i32
    %c0_i32_0 = arith.constant 0 : i32
    return %c0_i32 : i32
  }
  func.func @transform_2(%arg0: i32, %arg1: i32, %arg2: i32, %arg3: memref<1xi32, #tpu.memory_space<smem>>, %arg4: memref<1xi32, #tpu.memory_space<smem>>) -> (i32, i32, i32) {
    %0 = arith.index_cast %arg1 : i32 to index
    %1 = memref.load %arg3[%0] : memref<1xi32, #tpu.memory_space<smem>>
    %c0_i32 = arith.constant 0 : i32
    return %1, %arg0, %arg2 : i32, i32, i32
  }
  func.func @transform_3(%arg0: i32, %arg1: i32, %arg2: i32, %arg3: memref<1xi32, #tpu.memory_space<smem>>, %arg4: memref<1xi32, #tpu.memory_space<smem>>) -> (i32, i32, i32) {
    %0 = arith.index_cast %arg1 : i32 to index
    %1 = memref.load %arg4[%0] : memref<1xi32, #tpu.memory_space<smem>>
    %c0_i32 = arith.constant 0 : i32
    %c0_i32_0 = arith.constant 0 : i32
    return %1, %arg2, %c0_i32 : i32, i32, i32
  }
  func.func @transform_4(%arg0: i32, %arg1: i32, %arg2: i32, %arg3: memref<1xi32, #tpu.memory_space<smem>>, %arg4: memref<1xi32, #tpu.memory_space<smem>>) -> (i32, i32) {
    %c0_i32 = arith.constant 0 : i32
    %c0_i32_0 = arith.constant 0 : i32
    %c0_i32_1 = arith.constant 0 : i32
    return %c0_i32, %c0_i32_0 : i32, i32
  }
  func.func @transform_5(%arg0: i32, %arg1: i32, %arg2: i32, %arg3: memref<1xi32, #tpu.memory_space<smem>>, %arg4: memref<1xi32, #tpu.memory_space<smem>>) -> (i32, i32) {
    %c0_i32 = arith.constant 0 : i32
    %c0_i32_0 = arith.constant 0 : i32
    %c0_i32_1 = arith.constant 0 : i32
    return %c0_i32, %c0_i32_0 : i32, i32
  }
  func.func @transform_6(%arg0: i32, %arg1: i32, %arg2: i32, %arg3: memref<1xi32, #tpu.memory_space<smem>>, %arg4: memref<1xi32, #tpu.memory_space<smem>>) -> (i32, i32) {
    %c0_i32 = arith.constant 0 : i32
    %c0_i32_0 = arith.constant 0 : i32
    return %arg0, %c0_i32 : i32, i32
  }
  func.func @transform_7(%arg0: i32, %arg1: i32, %arg2: i32, %arg3: memref<1xi32, #tpu.memory_space<smem>>, %arg4: memref<1xi32, #tpu.memory_space<smem>>) -> (i32, i32) {
    %c0_i32 = arith.constant 0 : i32
    %c0_i32_0 = arith.constant 0 : i32
    return %arg0, %c0_i32 : i32, i32
  }
}

module attributes {stable_mosaic.version = 11 : i64} {
  func.func @drew_layer_kernel(%arg0: i32, %arg1: i32, %arg2: i32, %arg3: memref<2xi32, #tpu.memory_space<smem>>, %arg4: memref<2xi32, #tpu.memory_space<smem>>, %arg5: memref<2xf32, #tpu.memory_space<smem>>, %arg6: memref<1xf32, #tpu.memory_space<smem>>, %arg7: memref<1x128x128xbf16, #tpu.memory_space<vmem>>, %arg8: memref<1x128x128xbf16, #tpu.memory_space<vmem>>, %arg9: memref<128x128xbf16, #tpu.memory_space<vmem>>, %arg10: memref<1x128xf32, #tpu.memory_space<vmem>>, %arg11: memref<128x128xf32, #tpu.memory_space<vmem>>, %arg12: memref<128x128xf32, #tpu.memory_space<vmem>>, %arg13: memref<128x128xf32, #tpu.memory_space<vmem>>) attributes {dimension_semantics = [#tpu.dimension_semantics<parallel>, #tpu.dimension_semantics<arbitrary>, #tpu.dimension_semantics<arbitrary>], iteration_bounds = array<i64: 1, 2, 1>, scalar_prefetch = 2 : i64, scratch_operands = 1 : i64, tpu.core_type = #tpu.core_type<tc>, window_params = [{transform_indices = @transform_0, window_bounds = array<i64: 2>}, {transform_indices = @transform_1, window_bounds = array<i64: 1>}, {transform_indices = @transform_2, window_bounds = array<i64: 1, 128, 128>}, {transform_indices = @transform_3, window_bounds = array<i64: 1, 128, 128>}, {pipeline_mode = #tpu.pipeline_mode<synchronous>, transform_indices = @transform_4, window_bounds = array<i64: 128, 128>}, {pipeline_mode = #tpu.pipeline_mode<synchronous>, transform_indices = @transform_5, window_bounds = array<i64: 1, 128>}, {transform_indices = @transform_6, window_bounds = array<i64: 128, 128>}, {transform_indices = @transform_7, window_bounds = array<i64: 128, 128>}]} {
    %c0_i32 = arith.constant 0 : i32
    %0 = arith.cmpi eq, %arg1, %c0_i32 : i32
    %c0_i32_0 = arith.constant 0 : i32
    %1 = arith.cmpi eq, %arg2, %c0_i32_0 : i32
    %2 = arith.andi %0, %1 : i1
    %3 = arith.extui %2 : i1 to i32
    %c0_i32_1 = arith.constant 0 : i32
    %4 = arith.cmpi ne, %3, %c0_i32_1 : i32
    scf.if %4 {
      %cst_13 = arith.constant 0.000000e+00 : f32
      %22 = vector.broadcast %cst_13 : f32 to vector<128x128xf32>
      %c0_14 = arith.constant 0 : index
      %c0_15 = arith.constant 0 : index
      %23 = vector.load %arg13[%c0_14, %c0_15] : memref<128x128xf32, #tpu.memory_space<vmem>>, vector<128x128xf32>
      tpu.vector_store %arg13[%c0_14, %c0_15], %22 {strides = array<i32>} : memref<128x128xf32, #tpu.memory_space<vmem>>, vector<128x128xf32>,
    } else {
    }
    %c0 = arith.constant 0 : index
    %c0_2 = arith.constant 0 : index
    %c0_3 = arith.constant 0 : index
    %5 = vector.load %arg7[%c0, %c0_2, %c0_3] : memref<1x128x128xbf16, #tpu.memory_space<vmem>>, vector<1x128x128xbf16>
    %6 = vector.shape_cast %5 : vector<1x128x128xbf16> to vector<128x128xbf16>
    %c0_4 = arith.constant 0 : index
    %c0_5 = arith.constant 0 : index
    %c0_6 = arith.constant 0 : index
    %7 = vector.load %arg8[%c0_4, %c0_5, %c0_6] : memref<1x128x128xbf16, #tpu.memory_space<vmem>>, vector<1x128x128xbf16>
    %8 = vector.shape_cast %7 : vector<1x128x128xbf16> to vector<128x128xbf16>
    %cst = arith.constant dense<0.000000e+00> : vector<128x128xf32>
    %9 = tpu.matmul %6, %8, %cst {dimension_numbers = #tpu.dot_dimension_numbers<[1], [0], [0], [1], [0, 0, 1, 1], [], []>} : vector<128x128xbf16>, vector<128x128xbf16>, vector<128x128xf32> -> vector<128x128xf32>
    %c0_7 = arith.constant 0 : index
    %c0_8 = arith.constant 0 : index
    %10 = vector.load %arg13[%c0_7, %c0_8] : memref<128x128xf32, #tpu.memory_space<vmem>>, vector<128x128xf32>
    %11 = arith.index_cast %arg1 : i32 to index
    %12 = memref.load %arg5[%11] : memref<2xf32, #tpu.memory_space<smem>>
    %13 = vector.broadcast %12 : f32 to vector<128x128xf32>
    %14 = arith.mulf %13, %9 : vector<128x128xf32>
    %15 = arith.addf %10, %14 : vector<128x128xf32>
    %c0_9 = arith.constant 0 : index
    %c0_10 = arith.constant 0 : index
    %16 = vector.load %arg13[%c0_9, %c0_10] : memref<128x128xf32, #tpu.memory_space<vmem>>, vector<128x128xf32>
    tpu.vector_store %arg13[%c0_9, %c0_10], %15 {strides = array<i32>} : memref<128x128xf32, #tpu.memory_space<vmem>>, vector<128x128xf32>,
    %c1_i32 = arith.constant 1 : i32
    %17 = arith.cmpi eq, %arg1, %c1_i32 : i32
    %c0_i32_11 = arith.constant 0 : i32
    %18 = arith.cmpi eq, %arg2, %c0_i32_11 : i32
    %19 = arith.andi %17, %18 : i1
    %20 = arith.extui %19 : i1 to i32
    %c0_i32_12 = arith.constant 0 : i32
    %21 = arith.cmpi ne, %20, %c0_i32_12 : i32
    scf.if %21 {
      %c0_13 = arith.constant 0 : index
      %c0_14 = arith.constant 0 : index
      %22 = vector.load %arg13[%c0_13, %c0_14] : memref<128x128xf32, #tpu.memory_space<vmem>>, vector<128x128xf32>
      %23 = arith.truncf %22 : vector<128x128xf32> to vector<128x128xbf16>
      %c0_15 = arith.constant 0 : index
      %c0_16 = arith.constant 0 : index
      %24 = vector.load %arg9[%c0_15, %c0_16] : memref<128x128xbf16, #tpu.memory_space<vmem>>, vector<128x128xbf16>
      %cst_17 = arith.constant dense<0.000000e+00> : vector<128x128xf32>
      %25 = tpu.matmul %23, %24, %cst_17 {dimension_numbers = #tpu.dot_dimension_numbers<[1], [0], [0], [1], [0, 0, 1, 1], [], []>} : vector<128x128xbf16>, vector<128x128xbf16>, vector<128x128xf32> -> vector<128x128xf32>
      %c0_18 = arith.constant 0 : index
      %26 = memref.load %arg6[%c0_18] : memref<1xf32, #tpu.memory_space<smem>>
      %c0_19 = arith.constant 0 : index
      %c0_20 = arith.constant 0 : index
      %27 = vector.load %arg10[%c0_19, %c0_20] : memref<1x128xf32, #tpu.memory_space<vmem>>, vector<1x128xf32>
      %28 = vector.broadcast %26 : f32 to vector<1x128xf32>
      %29 = arith.mulf %28, %27 : vector<1x128xf32>
      %30 = vector.broadcast %29 : vector<1x128xf32> to vector<128x128xf32>
      %31 = arith.addf %25, %30 : vector<128x128xf32>
      %c0_21 = arith.constant 0 : index
      %c0_22 = arith.constant 0 : index
      %32 = vector.load %arg11[%c0_21, %c0_22] : memref<128x128xf32, #tpu.memory_space<vmem>>, vector<128x128xf32>
      %cst_23 = arith.constant 0.000000e+00 : f32
      %33 = vector.broadcast %cst_23 : f32 to vector<128x128xf32>
      %34 = arith.maximumf %31, %33 : vector<128x128xf32>
      %35 = arith.addf %32, %34 : vector<128x128xf32>
      %36 = arith.mulf %35, %35 : vector<128x128xf32>
      %cst_24 = arith.constant dense<0.000000e+00> : vector<128xf32>
      %37 = vector.multi_reduction <add>, %36, %cst_24 [1] : vector<128x128xf32> to vector<128xf32>
      %38 = vector.shape_cast %37 : vector<128xf32> to vector<128x1xf32>
      %cst_25 = arith.constant 1.000000e-24 : f32
      %39 = vector.broadcast %cst_25 : f32 to vector<128x1xf32>
      %40 = arith.maximumf %38, %39 : vector<128x1xf32>
      %41 = math.rsqrt %40 : vector<128x1xf32>
      %42 = vector.broadcast %41 : vector<128x1xf32> to vector<128x128xf32>
      %43 = arith.mulf %35, %42 : vector<128x128xf32>
      %c0_26 = arith.constant 0 : index
      %c0_27 = arith.constant 0 : index
      %44 = vector.load %arg12[%c0_26, %c0_27] : memref<128x128xf32, #tpu.memory_space<vmem>>, vector<128x128xf32>
      tpu.vector_store %arg12[%c0_26, %c0_27], %43 {strides = array<i32>} : memref<128x128xf32, #tpu.memory_space<vmem>>, vector<128x128xf32>,
    } else {
    }
    return
  }
  func.func @transform_0(%arg0: i32, %arg1: i32, %arg2: i32, %arg3: memref<2xi32, #tpu.memory_space<smem>>, %arg4: memref<2xi32, #tpu.memory_space<smem>>) -> i32 {
    %c0_i32 = arith.constant 0 : i32
    %c0_i32_0 = arith.constant 0 : i32
    return %c0_i32 : i32
  }
  func.func @transform_1(%arg0: i32, %arg1: i32, %arg2: i32, %arg3: memref<2xi32, #tpu.memory_space<smem>>, %arg4: memref<2xi32, #tpu.memory_space<smem>>) -> i32 {
    %c0_i32 = arith.constant 0 : i32
    %c0_i32_0 = arith.constant 0 : i32
    return %c0_i32 : i32
  }
  func.func @transform_2(%arg0: i32, %arg1: i32, %arg2: i32, %arg3: memref<2xi32, #tpu.memory_space<smem>>, %arg4: memref<2xi32, #tpu.memory_space<smem>>) -> (i32, i32, i32) {
    %0 = arith.index_cast %arg1 : i32 to index
    %1 = memref.load %arg3[%0] : memref<2xi32, #tpu.memory_space<smem>>
    %c0_i32 = arith.constant 0 : i32
    return %1, %arg0, %arg2 : i32, i32, i32
  }
  func.func @transform_3(%arg0: i32, %arg1: i32, %arg2: i32, %arg3: memref<2xi32, #tpu.memory_space<smem>>, %arg4: memref<2xi32, #tpu.memory_space<smem>>) -> (i32, i32, i32) {
    %0 = arith.index_cast %arg1 : i32 to index
    %1 = memref.load %arg4[%0] : memref<2xi32, #tpu.memory_space<smem>>
    %c0_i32 = arith.constant 0 : i32
    %c0_i32_0 = arith.constant 0 : i32
    return %1, %arg2, %c0_i32 : i32, i32, i32
  }
  func.func @transform_4(%arg0: i32, %arg1: i32, %arg2: i32, %arg3: memref<2xi32, #tpu.memory_space<smem>>, %arg4: memref<2xi32, #tpu.memory_space<smem>>) -> (i32, i32) {
    %c0_i32 = arith.constant 0 : i32
    %c0_i32_0 = arith.constant 0 : i32
    %c0_i32_1 = arith.constant 0 : i32
    return %c0_i32, %c0_i32_0 : i32, i32
  }
  func.func @transform_5(%arg0: i32, %arg1: i32, %arg2: i32, %arg3: memref<2xi32, #tpu.memory_space<smem>>, %arg4: memref<2xi32, #tpu.memory_space<smem>>) -> (i32, i32) {
    %c0_i32 = arith.constant 0 : i32
    %c0_i32_0 = arith.constant 0 : i32
    %c0_i32_1 = arith.constant 0 : i32
    return %c0_i32, %c0_i32_0 : i32, i32
  }
  func.func @transform_6(%arg0: i32, %arg1: i32, %arg2: i32, %arg3: memref<2xi32, #tpu.memory_space<smem>>, %arg4: memref<2xi32, #tpu.memory_space<smem>>) -> (i32, i32) {
    %c0_i32 = arith.constant 0 : i32
    %c0_i32_0 = arith.constant 0 : i32
    return %arg0, %c0_i32 : i32, i32
  }
  func.func @transform_7(%arg0: i32, %arg1: i32, %arg2: i32, %arg3: memref<2xi32, #tpu.memory_space<smem>>, %arg4: memref<2xi32, #tpu.memory_space<smem>>) -> (i32, i32) {
    %c0_i32 = arith.constant 0 : i32
    %c0_i32_0 = arith.constant 0 : i32
    return %arg0, %c0_i32 : i32, i32
  }
}

module attributes {stable_mosaic.version = 11 : i64} {
  func.func @drew_layer_kernel(%arg0: i32, %arg1: i32, %arg2: i32, %arg3: memref<3xi32, #tpu.memory_space<smem>>, %arg4: memref<3xi32, #tpu.memory_space<smem>>, %arg5: memref<3xf32, #tpu.memory_space<smem>>, %arg6: memref<1xf32, #tpu.memory_space<smem>>, %arg7: memref<1x128x128xbf16, #tpu.memory_space<vmem>>, %arg8: memref<1x128x128xbf16, #tpu.memory_space<vmem>>, %arg9: memref<128x128xbf16, #tpu.memory_space<vmem>>, %arg10: memref<1x128xf32, #tpu.memory_space<vmem>>, %arg11: memref<128x128xf32, #tpu.memory_space<vmem>>, %arg12: memref<128x128xf32, #tpu.memory_space<vmem>>, %arg13: memref<128x128xf32, #tpu.memory_space<vmem>>) attributes {dimension_semantics = [#tpu.dimension_semantics<parallel>, #tpu.dimension_semantics<arbitrary>, #tpu.dimension_semantics<arbitrary>], iteration_bounds = array<i64: 1, 3, 1>, scalar_prefetch = 2 : i64, scratch_operands = 1 : i64, tpu.core_type = #tpu.core_type<tc>, window_params = [{transform_indices = @transform_0, window_bounds = array<i64: 3>}, {transform_indices = @transform_1, window_bounds = array<i64: 1>}, {transform_indices = @transform_2, window_bounds = array<i64: 1, 128, 128>}, {transform_indices = @transform_3, window_bounds = array<i64: 1, 128, 128>}, {pipeline_mode = #tpu.pipeline_mode<synchronous>, transform_indices = @transform_4, window_bounds = array<i64: 128, 128>}, {pipeline_mode = #tpu.pipeline_mode<synchronous>, transform_indices = @transform_5, window_bounds = array<i64: 1, 128>}, {transform_indices = @transform_6, window_bounds = array<i64: 128, 128>}, {transform_indices = @transform_7, window_bounds = array<i64: 128, 128>}]} {
    %c0_i32 = arith.constant 0 : i32
    %0 = arith.cmpi eq, %arg1, %c0_i32 : i32
    %c0_i32_0 = arith.constant 0 : i32
    %1 = arith.cmpi eq, %arg2, %c0_i32_0 : i32
    %2 = arith.andi %0, %1 : i1
    %3 = arith.extui %2 : i1 to i32
    %c0_i32_1 = arith.constant 0 : i32
    %4 = arith.cmpi ne, %3, %c0_i32_1 : i32
    scf.if %4 {
      %cst_13 = arith.constant 0.000000e+00 : f32
      %22 = vector.broadcast %cst_13 : f32 to vector<128x128xf32>
      %c0_14 = arith.constant 0 : index
      %c0_15 = arith.constant 0 : index
      %23 = vector.load %arg13[%c0_14, %c0_15] : memref<128x128xf32, #tpu.memory_space<vmem>>, vector<128x128xf32>
      tpu.vector_store %arg13[%c0_14, %c0_15], %22 {strides = array<i32>} : memref<128x128xf32, #tpu.memory_space<vmem>>, vector<128x128xf32>,
    } else {
    }
    %c0 = arith.constant 0 : index
    %c0_2 = arith.constant 0 : index
    %c0_3 = arith.constant 0 : index
    %5 = vector.load %arg7[%c0, %c0_2, %c0_3] : memref<1x128x128xbf16, #tpu.memory_space<vmem>>, vector<1x128x128xbf16>
    %6 = vector.shape_cast %5 : vector<1x128x128xbf16> to vector<128x128xbf16>
    %c0_4 = arith.constant 0 : index
    %c0_5 = arith.constant 0 : index
    %c0_6 = arith.constant 0 : index
    %7 = vector.load %arg8[%c0_4, %c0_5, %c0_6] : memref<1x128x128xbf16, #tpu.memory_space<vmem>>, vector<1x128x128xbf16>
    %8 = vector.shape_cast %7 : vector<1x128x128xbf16> to vector<128x128xbf16>
    %cst = arith.constant dense<0.000000e+00> : vector<128x128xf32>
    %9 = tpu.matmul %6, %8, %cst {dimension_numbers = #tpu.dot_dimension_numbers<[1], [0], [0], [1], [0, 0, 1, 1], [], []>} : vector<128x128xbf16>, vector<128x128xbf16>, vector<128x128xf32> -> vector<128x128xf32>
    %c0_7 = arith.constant 0 : index
    %c0_8 = arith.constant 0 : index
    %10 = vector.load %arg13[%c0_7, %c0_8] : memref<128x128xf32, #tpu.memory_space<vmem>>, vector<128x128xf32>
    %11 = arith.index_cast %arg1 : i32 to index
    %12 = memref.load %arg5[%11] : memref<3xf32, #tpu.memory_space<smem>>
    %13 = vector.broadcast %12 : f32 to vector<128x128xf32>
    %14 = arith.mulf %13, %9 : vector<128x128xf32>
    %15 = arith.addf %10, %14 : vector<128x128xf32>
    %c0_9 = arith.constant 0 : index
    %c0_10 = arith.constant 0 : index
    %16 = vector.load %arg13[%c0_9, %c0_10] : memref<128x128xf32, #tpu.memory_space<vmem>>, vector<128x128xf32>
    tpu.vector_store %arg13[%c0_9, %c0_10], %15 {strides = array<i32>} : memref<128x128xf32, #tpu.memory_space<vmem>>, vector<128x128xf32>,
    %c2_i32 = arith.constant 2 : i32
    %17 = arith.cmpi eq, %arg1, %c2_i32 : i32
    %c0_i32_11 = arith.constant 0 : i32
    %18 = arith.cmpi eq, %arg2, %c0_i32_11 : i32
    %19 = arith.andi %17, %18 : i1
    %20 = arith.extui %19 : i1 to i32
    %c0_i32_12 = arith.constant 0 : i32
    %21 = arith.cmpi ne, %20, %c0_i32_12 : i32
    scf.if %21 {
      %c0_13 = arith.constant 0 : index
      %c0_14 = arith.constant 0 : index
      %22 = vector.load %arg13[%c0_13, %c0_14] : memref<128x128xf32, #tpu.memory_space<vmem>>, vector<128x128xf32>
      %23 = arith.truncf %22 : vector<128x128xf32> to vector<128x128xbf16>
      %c0_15 = arith.constant 0 : index
      %c0_16 = arith.constant 0 : index
      %24 = vector.load %arg9[%c0_15, %c0_16] : memref<128x128xbf16, #tpu.memory_space<vmem>>, vector<128x128xbf16>
      %cst_17 = arith.constant dense<0.000000e+00> : vector<128x128xf32>
      %25 = tpu.matmul %23, %24, %cst_17 {dimension_numbers = #tpu.dot_dimension_numbers<[1], [0], [0], [1], [0, 0, 1, 1], [], []>} : vector<128x128xbf16>, vector<128x128xbf16>, vector<128x128xf32> -> vector<128x128xf32>
      %c0_18 = arith.constant 0 : index
      %26 = memref.load %arg6[%c0_18] : memref<1xf32, #tpu.memory_space<smem>>
      %c0_19 = arith.constant 0 : index
      %c0_20 = arith.constant 0 : index
      %27 = vector.load %arg10[%c0_19, %c0_20] : memref<1x128xf32, #tpu.memory_space<vmem>>, vector<1x128xf32>
      %28 = vector.broadcast %26 : f32 to vector<1x128xf32>
      %29 = arith.mulf %28, %27 : vector<1x128xf32>
      %30 = vector.broadcast %29 : vector<1x128xf32> to vector<128x128xf32>
      %31 = arith.addf %25, %30 : vector<128x128xf32>
      %c0_21 = arith.constant 0 : index
      %c0_22 = arith.constant 0 : index
      %32 = vector.load %arg11[%c0_21, %c0_22] : memref<128x128xf32, #tpu.memory_space<vmem>>, vector<128x128xf32>
      %cst_23 = arith.constant 0.000000e+00 : f32
      %33 = vector.broadcast %cst_23 : f32 to vector<128x128xf32>
      %34 = arith.maximumf %31, %33 : vector<128x128xf32>
      %35 = arith.addf %32, %34 : vector<128x128xf32>
      %36 = arith.mulf %35, %35 : vector<128x128xf32>
      %cst_24 = arith.constant dense<0.000000e+00> : vector<128xf32>
      %37 = vector.multi_reduction <add>, %36, %cst_24 [1] : vector<128x128xf32> to vector<128xf32>
      %38 = vector.shape_cast %37 : vector<128xf32> to vector<128x1xf32>
      %cst_25 = arith.constant 1.000000e-24 : f32
      %39 = vector.broadcast %cst_25 : f32 to vector<128x1xf32>
      %40 = arith.maximumf %38, %39 : vector<128x1xf32>
      %41 = math.rsqrt %40 : vector<128x1xf32>
      %42 = vector.broadcast %41 : vector<128x1xf32> to vector<128x128xf32>
      %43 = arith.mulf %35, %42 : vector<128x128xf32>
      %c0_26 = arith.constant 0 : index
      %c0_27 = arith.constant 0 : index
      %44 = vector.load %arg12[%c0_26, %c0_27] : memref<128x128xf32, #tpu.memory_space<vmem>>, vector<128x128xf32>
      tpu.vector_store %arg12[%c0_26, %c0_27], %43 {strides = array<i32>} : memref<128x128xf32, #tpu.memory_space<vmem>>, vector<128x128xf32>,
    } else {
    }
    return
  }
  func.func @transform_0(%arg0: i32, %arg1: i32, %arg2: i32, %arg3: memref<3xi32, #tpu.memory_space<smem>>, %arg4: memref<3xi32, #tpu.memory_space<smem>>) -> i32 {
    %c0_i32 = arith.constant 0 : i32
    %c0_i32_0 = arith.constant 0 : i32
    return %c0_i32 : i32
  }
  func.func @transform_1(%arg0: i32, %arg1: i32, %arg2: i32, %arg3: memref<3xi32, #tpu.memory_space<smem>>, %arg4: memref<3xi32, #tpu.memory_space<smem>>) -> i32 {
    %c0_i32 = arith.constant 0 : i32
    %c0_i32_0 = arith.constant 0 : i32
    return %c0_i32 : i32
  }
  func.func @transform_2(%arg0: i32, %arg1: i32, %arg2: i32, %arg3: memref<3xi32, #tpu.memory_space<smem>>, %arg4: memref<3xi32, #tpu.memory_space<smem>>) -> (i32, i32, i32) {
    %0 = arith.index_cast %arg1 : i32 to index
    %1 = memref.load %arg3[%0] : memref<3xi32, #tpu.memory_space<smem>>
    %c0_i32 = arith.constant 0 : i32
    return %1, %arg0, %arg2 : i32, i32, i32
  }
  func.func @transform_3(%arg0: i32, %arg1: i32, %arg2: i32, %arg3: memref<3xi32, #tpu.memory_space<smem>>, %arg4: memref<3xi32, #tpu.memory_space<smem>>) -> (i32, i32, i32) {
    %0 = arith.index_cast %arg1 : i32 to index
    %1 = memref.load %arg4[%0] : memref<3xi32, #tpu.memory_space<smem>>
    %c0_i32 = arith.constant 0 : i32
    %c0_i32_0 = arith.constant 0 : i32
    return %1, %arg2, %c0_i32 : i32, i32, i32
  }
  func.func @transform_4(%arg0: i32, %arg1: i32, %arg2: i32, %arg3: memref<3xi32, #tpu.memory_space<smem>>, %arg4: memref<3xi32, #tpu.memory_space<smem>>) -> (i32, i32) {
    %c0_i32 = arith.constant 0 : i32
    %c0_i32_0 = arith.constant 0 : i32
    %c0_i32_1 = arith.constant 0 : i32
    return %c0_i32, %c0_i32_0 : i32, i32
  }
  func.func @transform_5(%arg0: i32, %arg1: i32, %arg2: i32, %arg3: memref<3xi32, #tpu.memory_space<smem>>, %arg4: memref<3xi32, #tpu.memory_space<smem>>) -> (i32, i32) {
    %c0_i32 = arith.constant 0 : i32
    %c0_i32_0 = arith.constant 0 : i32
    %c0_i32_1 = arith.constant 0 : i32
    return %c0_i32, %c0_i32_0 : i32, i32
  }
  func.func @transform_6(%arg0: i32, %arg1: i32, %arg2: i32, %arg3: memref<3xi32, #tpu.memory_space<smem>>, %arg4: memref<3xi32, #tpu.memory_space<smem>>) -> (i32, i32) {
    %c0_i32 = arith.constant 0 : i32
    %c0_i32_0 = arith.constant 0 : i32
    return %arg0, %c0_i32 : i32, i32
  }
  func.func @transform_7(%arg0: i32, %arg1: i32, %arg2: i32, %arg3: memref<3xi32, #tpu.memory_space<smem>>, %arg4: memref<3xi32, #tpu.memory_space<smem>>) -> (i32, i32) {
    %c0_i32 = arith.constant 0 : i32
    %c0_i32_0 = arith.constant 0 : i32
    return %arg0, %c0_i32 : i32, i32
  }
}

</mosaic_0001>

<bundles_post_ra>
// kernel: drew_share_gnn_forward.3
= control target key start
LH: loop header
LB: loop body
LE: loop exit
PB: predicated region body
PF: predicated region fallthrough
CT: control target
= control target key end

     0   :  { %s1256_s1 = inlined_call_operand.<no memory space> [shape: s32[1], index: 1, kind: input, shape index: {}, may-alias: {0,1}]   ;;  %s1257_s0 = inlined_call_operand.<no memory space> [shape: s32[1], index: 0, kind: input, shape index: {}, may-alias: {0,1}]   ;;  %s1258_s6 = inlined_call_operand.vmem [shape: bf16[128,128], index: 6, kind: input, shape index: {}]   ;;  %s1259_s5 = inlined_call_operand.vmem [shape: bf16[3,128,128], index: 5, kind: input, shape index: {}]   ;;  %s1260_s4 = inlined_call_operand.vmem [shape: bf16[3,128,128], index: 4, kind: input, shape index: {}]   ;;  %s1261_s2 = inlined_call_operand.<no memory space> [shape: f32[1], index: 2, kind: input, shape index: {}, may-alias: {2,3}]   ;;  %s1262_s3 = inlined_call_operand.<no memory space> [shape: f32[1], index: 3, kind: input, shape index: {}, may-alias: {2,3}]   ;;  %s1263_s7 = inlined_call_operand.vmem [shape: f32[1,128], index: 7, kind: input, shape index: {}]   ;;  %s1264_s8 = inlined_call_operand.vmem [shape: f32[128,128], index: 8, kind: input, shape index: {}]   ;;  %s1265_s9 = inlined_call_operand.vmem [shape: f32[128,128], index: 9, kind: output, shape index: {}]  }
   0x1   :  { %p66_p0 = scmp.lt.s32.totalorder %s1256_s1, 2  ;;  %p59_p1 = scmp.lt.s32.totalorder %s1257_s0, 2  ;;  %v901_v0 = vld [vmem:[%s1258_s6] sm:$0xff]   ;;  %v902_v1 = vld [vmem:[%s1258_s6 + $0x8] sm:$0xff]   ;;  %v903_v2 = vld [vmem:[%s1258_s6 + $0x10] sm:$0xff]   ;;  %v337_v25 = vstv %s1261_s2 }
   0x2   :  { %853 = vmatprep.subr.bf16.mxu1 %v901_v0  ;;  %v904_v5 = vld [vmem:[%s1258_s6 + $0x18] sm:$0xff]   ;;  %v905_v7 = vld [vmem:[%s1258_s6 + $0x20] sm:$0xff]   ;;  %v906_v12 = vld [vmem:[%s1258_s6 + $0x28] sm:$0xff]  }
   0x3   :  { %s1267_s1 = smov (!%p66_p0, %s1256_s1), 2  ;;  %s1269_s0 = smov (!%p59_p1, %s1257_s0), 2  ;;  %854 = vmatpush3.bf16.msra.mxu1 %v901_v0  ;;  %v907_v22 = vld [vmem:[%s1258_s6 + $0x30] sm:$0xff]   ;;  %v908_v23 = vld [vmem:[%s1258_s6 + $0x38] sm:$0xff]  }
   0x4   :  { %s788_s21 = sshll.u32 %s1267_s1, 6  ;;  %855 = vmatprep.subr.bf16.mxu1 %v902_v1  ;;  %s787_s27 = sshll.u32 %s1269_s0, 6 }
   0x5   :  { %s1012_s24 = scalar_lea.vmem %s1259_s5, %s788_s21  ;;  %s1026_s30 = scalar_lea.vmem %s1260_s4, %s787_s27 }
   0x6   :  { %v885_v3 = vld [vmem:[%s1012_s24] sm:$0xff]   ;;  %v886_v4 = vld [vmem:[%s1012_s24 + $0x8] sm:$0xff]   ;;  %v887_v6 = vld [vmem:[%s1012_s24 + $0x10] sm:$0xff]  }
   0x7   :  { %821 = vmatprep.subr.bf16.mxu0 %v885_v3  ;;  %856 = vmatpush3.bf16.msra.mxu1 %v902_v1  ;;  %v888_v8 = vld [vmem:[%s1012_s24 + $0x18] sm:$0xff]   ;;  %v893_v9 = vld [vmem:[%s1026_s30] sm:$0xff]   ;;  %v890_v11 = vld [vmem:[%s1012_s24 + $0x28] sm:$0xff]   ;;  %v433_v1 = vlaneseq }
   0x8   :  { %822 = vmatpush3.bf16.msra.mxu0 %v885_v3  ;;  %857 = vmatprep.subr.bf16.mxu1 %v903_v2  ;;  %v889_v10 = vld [vmem:[%s1012_s24 + $0x20] sm:$0xff]   ;;  %v891_v13 = vld [vmem:[%s1012_s24 + $0x30] sm:$0xff]   ;;  %v892_v14 = vld [vmem:[%s1012_s24 + $0x38] sm:$0xff]  }
   0x9   :  { %823 = vmatprep.subr.bf16.mxu0 %v886_v4  ;;  %837 = vmatprep.mubr.bf16.mxu0 %v893_v9  ;;  %v894_v15 = vld [vmem:[%s1026_s30 + $0x8] sm:$0xff]   ;;  %v895_v16 = vld [vmem:[%s1026_s30 + $0x10] sm:$0xff]   ;;  %v896_v17 = vld [vmem:[%s1026_s30 + $0x18] sm:$0xff]  }
   0xa   :  { %v897_v18 = vld [vmem:[%s1026_s30 + $0x20] sm:$0xff]   ;;  %v898_v19 = vld [vmem:[%s1026_s30 + $0x28] sm:$0xff]   ;;  %v899_v20 = vld [vmem:[%s1026_s30 + $0x30] sm:$0xff]  }
   0xb   :  { %858 = vmatpush3.bf16.msra.mxu1 %v903_v2  ;;  %v900_v21 = vld [vmem:[%s1026_s30 + $0x38] sm:$0xff]   ;;  %v434_v2 = vshrl.u32 %v433_v1, 7  ;;  %v429_v3 = vld [vmem:[%s1263_s7] sm:$0x1] }
   0xc   :  { %824 = vmatpush3.bf16.msra.mxu0 %v886_v4  ;;  %859 = vmatprep.subr.bf16.mxu1 %v904_v5  ;;  %v430_v4 = vstv %s1262_s3 }
   0xd   :  { %825 = vmatprep.subr.bf16.mxu0 %v887_v6 }
   0xf   :  { %860 = vmatpush3.bf16.msra.mxu1 %v904_v5  ;;  %v431_v5 = vmul.f32 %v430_v4, %v429_v3  ;;  %v591_v4 = vld [vmem:[%s1264_s8 + $0x40] sm:$0xff] }
  0x10   :  { %826 = vmatpush3.bf16.msra.mxu0 %v887_v6  ;;  %861 = vmatprep.subr.bf16.mxu1 %v905_v7  ;;  %v435_v6 = vsub.s32 0, %v434_v2 }
  0x11   :  { %827 = vmatprep.subr.bf16.mxu0 %v888_v8 }
  0x13   :  { %862 = vmatpush3.bf16.msra.mxu1 %v905_v7  ;;  %v1062_v7 = vrot.slane %v431_v5, %v435_v6 }
  0x14   :  { %828 = vmatpush3.bf16.msra.mxu0 %v888_v8  ;;  %863 = vmatprep.subr.bf16.mxu1 %v906_v12 }
  0x15   :  { %829 = vmatprep.subr.bf16.mxu0 %v889_v10 }
  0x17   :  { %864 = vmatpush3.bf16.msra.mxu1 %v906_v12 }
  0x18   :  { %830 = vmatpush3.bf16.msra.mxu0 %v889_v10  ;;  %865 = vmatprep.subr.bf16.mxu1 %v907_v22 }
  0x19   :  { %831 = vmatprep.subr.bf16.mxu0 %v890_v11 }
  0x1b   :  { %866 = vmatpush3.bf16.msra.mxu1 %v907_v22  ;;  %v584_v22 = vld [vmem:[%s1264_s8 + $0x8] sm:$0xff] }
  0x1c   :  { %832 = vmatpush3.bf16.msra.mxu0 %v890_v11  ;;  %867 = vmatprep.subr.bf16.mxu1 %v908_v23 }
  0x1d   :  { %833 = vmatprep.subr.bf16.mxu0 %v891_v13 }
  0x1f   :  { %868 = vmatpush3.bf16.msra.mxu1 %v908_v23 }
  0x20   :  { %834 = vmatpush3.bf16.msra.mxu0 %v891_v13  ;;  %v585_v13 = vld [vmem:[%s1264_s8 + $0x10] sm:$0xff] }
  0x21   :  { %835 = vmatprep.subr.bf16.mxu0 %v892_v14 }
  0x24   :  { %836 = vmatpush3.bf16.msra.mxu0 %v892_v14 }
  0x27   :  { %838 = vmatmul.mubr.bf16.vlgmr.msra.gmra.mrb[0].mxu0 %v894_v15 }
  0x28   :  { %841 = vmatprep.mubr.bf16.mxu0 %v895_v16 }
  0x2f   :  { %842 = vmatmul.mubr.bf16.gmra.mrb[4].mxu0 %v896_v17  ;;  %v583_v17 = vld [vmem:[%s1264_s8] sm:$0xff] }
  0x30   :  { %845 = vmatprep.mubr.bf16.mxu0 %v897_v18 }
  0x37   :  { %846 = vmatmul.mubr.bf16.gmra.mrb[8].mxu0 %v898_v19  ;;  %v586_v19 = vld [vmem:[%s1264_s8 + $0x18] sm:$0xff] }
  0x38   :  { %849 = vmatprep.mubr.bf16.mxu0 %v899_v20 }
  0x3f   :  { %850 = vmatmul.mubr.bf16.gmra.mrb[12].mxu0 %v900_v21 }
  0xfa   :  { %v839_v24 = vpop.f32.mrb[0].mxu0 }
  0xfb   :  { %v257_v26 = vpop.f32.mrb[1].mxu0  ;;  %v340_v28 = vmul.f32 %v839_v24, %v337_v25 }
  0xfc   :  { %v840_v27 = vpop.f32.mrb[2].mxu0  ;;  %v338_v31 = vmul.f32 %v337_v25, %v257_v26 }
  0xfd   :  { %v341_v29 = vmul.f32 %v840_v27, %v337_v25  ;;  %v260_v30 = vpop.f32.mrb[3].mxu0 }
  0xfe   :  { %v339_v32 = vmul.f32 %v337_v25, %v260_v30 }
  0xff   :  { %v405_v33 = vpack.c.bf16 %v341_v29, %v340_v28 }
 0x100   :  { %v404_v34 = vpack.c.bf16 %v339_v32, %v338_v31 }
 0x102   :  { %v843_v35 = vpop.f32.mrb[4].mxu0  ;;  %869 = vmatprep.mubr.bf16.mxu1 %v404_v34 }
 0x103   :  { %v273_v36 = vpop.f32.mrb[5].mxu0  ;;  %870 = vmatmul.mubr.bf16.vlgmr.msra.gmra.mrb[0].mxu1 %v405_v33  ;;  %v344_v38 = vmul.f32 %v843_v35, %v337_v25  ;;  %v589_v33 = vld [vmem:[%s1264_s8 + $0x30] sm:$0xff] }
 0x104   :  { %v844_v37 = vpop.f32.mrb[6].mxu0  ;;  %v342_v41 = vmul.f32 %v337_v25, %v273_v36 }
 0x105   :  { %v345_v39 = vmul.f32 %v844_v37, %v337_v25  ;;  %v276_v40 = vpop.f32.mrb[7].mxu0 }
 0x106   :  { %v343_v42 = vmul.f32 %v337_v25, %v276_v40 }
 0x107   :  { %v407_v43 = vpack.c.bf16 %v345_v39, %v344_v38 }
 0x108   :  { %v406_v44 = vpack.c.bf16 %v343_v42, %v342_v41  ;;  %v590_v41 = vld [vmem:[%s1264_s8 + $0x38] sm:$0xff] }
 0x10a   :  { %v847_v45 = vpop.f32.mrb[8].mxu0  ;;  %873 = vmatprep.mubr.bf16.mxu1 %v406_v44 }
 0x10b   :  { %v289_v46 = vpop.f32.mrb[9].mxu0  ;;  %874 = vmatmul.mubr.bf16.gmra.mrb[4].mxu1 %v407_v43  ;;  %v348_v48 = vmul.f32 %v847_v45, %v337_v25  ;;  %v587_v45 = vld [vmem:[%s1264_s8 + $0x20] sm:$0xff] }
 0x10c   :  { %v848_v47 = vpop.f32.mrb[10].mxu0  ;;  %v346_v51 = vmul.f32 %v337_v25, %v289_v46 }
 0x10d   :  { %v349_v49 = vmul.f32 %v848_v47, %v337_v25  ;;  %v292_v50 = vpop.f32.mrb[11].mxu0  ;;  %v588_v47 = vld [vmem:[%s1264_s8 + $0x28] sm:$0xff] }
 0x10e   :  { %v347_v52 = vmul.f32 %v337_v25, %v292_v50 }
 0x10f   :  { %v409_v53 = vpack.c.bf16 %v349_v49, %v348_v48 }
 0x110   :  { %v408_v54 = vpack.c.bf16 %v347_v52, %v346_v51 }
 0x112   :  { %v851_v55 = vpop.f32.mrb[12].mxu0  ;;  %877 = vmatprep.mubr.bf16.mxu1 %v408_v54 }
 0x113   :  { %v305_v56 = vpop.f32.mrb[13].mxu0  ;;  %878 = vmatmul.mubr.bf16.gmra.mrb[8].mxu1 %v409_v53  ;;  %v352_v58 = vmul.f32 %v851_v55, %v337_v25 }
 0x114   :  { %v852_v57 = vpop.f32.mrb[14].mxu0  ;;  %v350_v61 = vmul.f32 %v337_v25, %v305_v56 }
 0x115   :  { %v353_v59 = vmul.f32 %v852_v57, %v337_v25  ;;  %v308_v60 = vpop.f32.mrb[15].mxu0  ;;  %v593_v57 = vld [vmem:[%s1264_s8 + $0x50] sm:$0xff] }
 0x116   :  { %v351_v62 = vmul.f32 %v337_v25, %v308_v60 }
 0x117   :  { %v411_v63 = vpack.c.bf16 %v353_v59, %v352_v58 }
 0x118   :  { %v410_v0 = vpack.c.bf16 %v351_v62, %v350_v61 }
 0x11a   :  { %881 = vmatprep.mubr.bf16.mxu1 %v410_v0  ;;  %v594_v0 = vld [vmem:[%s1264_s8 + $0x58] sm:$0xff] }
 0x11b   :  { %882 = vmatmul.mubr.bf16.gmra.mrb[12].mxu1 %v411_v63 }
 0x1d6   :  { %v871_v8 = vpop.f32.mrb[0].mxu1 }
 0x1d7   :  { %v529_v9 = vadd.f32 %v871_v8, %v1062_v7  ;;  %v520_v10 = vpop.f32.mrb[1].mxu1  ;;  %v592_v8 = vld [vmem:[%s1264_s8 + $0x48] sm:$0xff] }
 0x1d8   :  { %v521_v11 = vadd.f32 %v520_v10, %v1062_v7  ;;  %v872_v12 = vpop.f32.mrb[2].mxu1 }
 0x1d9   :  { %v601_v14 = vmax.f32 %v529_v9, 0.0  ;;  %v532_v15 = vadd.f32 %v872_v12, %v1062_v7  ;;  %v523_v16 = vpop.f32.mrb[3].mxu1 }
 0x1da   :  { %v599_v18 = vmax.f32 %v521_v11, 0.0  ;;  %v524_v20 = vadd.f32 %v523_v16, %v1062_v7 }
 0x1db   :  { %v602_v21 = vmax.f32 %v532_v15, 0.0  ;;  %v1080_v23 = vadd.f32 %v601_v14, %v585_v13 }
 0x1dc   :  { %v600_v24 = vmax.f32 %v524_v20, 0.0  ;;  %v1082_v25 = vadd.f32 %v599_v18, %v583_v17  ;;  %v595_v20 = vld [vmem:[%s1264_s8 + $0x60] sm:$0xff] }
 0x1dd   :  { %v1084_v26 = vadd.f32 %v602_v21, %v586_v19  ;;  %v633_v27 = vmul.f32 %v1080_v23, %v1080_v23 }
 0x1de   :  { %v1088_v28 = vadd.f32 %v600_v24, %v584_v22  ;;  %v875_v29 = vpop.f32.mrb[4].mxu1  ;;  %v631_v30 = vmul.f32 %v1082_v25, %v1082_v25 }
 0x1df   :  { %v545_v31 = vadd.f32 %v875_v29, %v1062_v7  ;;  %651 = vadd.xlane.f32.xlu1 %v633_v27  ;;  %v536_v32 = vpop.f32.mrb[5].mxu1  ;;  %v634_v39 = vmul.f32 %v1084_v26, %v1084_v26 }
 0x1e0   :  { %v537_v34 = vadd.f32 %v536_v32, %v1062_v7  ;;  %647 = vadd.xlane.f32.xlu0 %v631_v30  ;;  %v876_v35 = vpop.f32.mrb[6].mxu1  ;;  %v632_v43 = vmul.f32 %v1088_v28, %v1088_v28  ;;  %v596_v32 = vld [vmem:[%s1264_s8 + $0x68] sm:$0xff] }
 0x1e1   :  { %v605_v36 = vmax.f32 %v545_v31, 0.0  ;;  %v548_v37 = vadd.f32 %v876_v35, %v1062_v7  ;;  %v539_v38 = vpop.f32.mrb[7].mxu1  ;;  %v597_v31 = vld [vmem:[%s1264_s8 + $0x70] sm:$0xff] }
 0x1e2   :  { %v603_v40 = vmax.f32 %v537_v34, 0.0  ;;  %v540_v42 = vadd.f32 %v539_v38, %v1062_v7 }
 0x1e3   :  { %v1106_v44 = vadd.f32 %v605_v36, %v589_v33  ;;  %v606_v46 = vmax.f32 %v548_v37, 0.0  ;;  %653 = vadd.xlane.f32.xlu1 %v634_v39 }
 0x1e4   :  { %v604_v48 = vmax.f32 %v540_v42, 0.0  ;;  %649 = vadd.xlane.f32.xlu0 %v632_v43  ;;  %v1118_v51 = vadd.f32 %v603_v40, %v587_v45 }
 0x1e5   :  { %v1114_v49 = vadd.f32 %v606_v46, %v590_v41  ;;  %v637_v50 = vmul.f32 %v1106_v44, %v1106_v44 }
 0x1e6   :  { %v879_v52 = vpop.f32.mrb[8].mxu1  ;;  %v1120_v53 = vadd.f32 %v604_v48, %v588_v47  ;;  %v635_v2 = vmul.f32 %v1118_v51, %v1118_v51 }
 0x1e7   :  { %v561_v54 = vadd.f32 %v879_v52, %v1062_v7  ;;  %v552_v55 = vpop.f32.mrb[9].mxu1  ;;  %v638_v56 = vmul.f32 %v1114_v49, %v1114_v49 }
 0x1e8   :  { %v553_v58 = vadd.f32 %v552_v55, %v1062_v7  ;;  %659 = vadd.xlane.f32.xlu0 %v637_v50  ;;  %v880_v59 = vpop.f32.mrb[10].mxu1  ;;  %v636_v6 = vmul.f32 %v1120_v53, %v1120_v53 }
 0x1e9   :  { %v609_v60 = vmax.f32 %v561_v54, 0.0  ;;  %v564_v61 = vadd.f32 %v880_v59, %v1062_v7  ;;  %661 = vadd.xlane.f32.xlu1 %v638_v56  ;;  %v555_v62 = vpop.f32.mrb[11].mxu1 }
 0x1ea   :  { %v607_v63 = vmax.f32 %v553_v58, 0.0  ;;  %v556_v1 = vadd.f32 %v555_v62, %v1062_v7 }
 0x1eb   :  { %v1136_v3 = vadd.f32 %v609_v60, %v593_v57  ;;  %v610_v5 = vmax.f32 %v564_v61, 0.0 }
 0x1ec   :  { %v608_v9 = vmax.f32 %v556_v1, 0.0  ;;  %655 = vadd.xlane.f32.xlu0 %v635_v2  ;;  %v1150_v12 = vadd.f32 %v607_v63, %v591_v4 }
 0x1ed   :  { %v1146_v10 = vadd.f32 %v610_v5, %v594_v0  ;;  %657 = vadd.xlane.f32.xlu1 %v636_v6  ;;  %v641_v11 = vmul.f32 %v1136_v3, %v1136_v3 }
 0x1ee   :  { %v883_v13 = vpop.f32.mrb[12].mxu1  ;;  %v1152_v14 = vadd.f32 %v608_v9, %v592_v8  ;;  %v639_v30 = vmul.f32 %v1150_v12, %v1150_v12 }
 0x1ef   :  { %v577_v15 = vadd.f32 %v883_v13, %v1062_v7  ;;  %v568_v16 = vpop.f32.mrb[13].mxu1  ;;  %v642_v17 = vmul.f32 %v1146_v10, %v1146_v10 }
 0x1f0   :  { %v569_v18 = vadd.f32 %v568_v16, %v1062_v7  ;;  %667 = vadd.xlane.f32.xlu0 %v641_v11  ;;  %v884_v19 = vpop.f32.mrb[14].mxu1  ;;  %v640_v33 = vmul.f32 %v1152_v14, %v1152_v14 }
 0x1f1   :  { %v580_v21 = vadd.f32 %v884_v19, %v1062_v7  ;;  %669 = vadd.xlane.f32.xlu1 %v642_v17  ;;  %v571_v22 = vpop.f32.mrb[15].mxu1  ;;  %v613_v24 = vmax.f32 %v577_v15, 0.0 }
 0x1f2   :  { %v611_v27 = vmax.f32 %v569_v18, 0.0  ;;  %v572_v29 = vadd.f32 %v571_v22, %v1062_v7  ;;  %v598_v7 = vld [vmem:[%s1264_s8 + $0x78] sm:$0xff] }
 0x1f3   :  { %v614_v35 = vmax.f32 %v580_v21, 0.0  ;;  %v1178_v37 = vadd.f32 %v613_v24, %v597_v31 }
 0x1f4   :  { %v1173_v34 = vadd.f32 %v611_v27, %v595_v20  ;;  %v612_v36 = vmax.f32 %v572_v29, 0.0  ;;  %663 = vadd.xlane.f32.xlu0 %v639_v30 }
 0x1f5   :  { %665 = vadd.xlane.f32.xlu1 %v640_v33  ;;  %v1184_v40 = vadd.f32 %v614_v35, %v598_v7  ;;  %v645_v42 = vmul.f32 %v1178_v37, %v1178_v37 }
 0x1f6   :  { %v1180_v38 = vadd.f32 %v612_v36, %v596_v32  ;;  %v643_v39 = vmul.f32 %v1173_v34, %v1173_v34 }
 0x1f7   :  { %v646_v43 = vmul.f32 %v1184_v40, %v1184_v40 }
 0x1f8   :  { %671 = vadd.xlane.f32.xlu0 %v643_v39  ;;  %v644_v41 = vmul.f32 %v1180_v38, %v1180_v38 }
 0x1fa   :  { %673 = vadd.xlane.f32.xlu1 %v644_v41 }
 0x1fc   :  { %675 = vadd.xlane.f32.xlu0 %v645_v42 }
 0x1fe   :  { %677 = vadd.xlane.f32.xlu1 %v646_v43 }
 0x26c   :  { %v652_v45 = vpop.xlane.xlu1 %651 }
 0x26d   :  { %v681_v46 = vmax.f32 %v652_v45, 1e-24  ;;  %v648_v47 = vpop.xlane.xlu0 %647 }
 0x26e   :  { %v679_v48 = vmax.f32 %v648_v47, 1e-24 }
 0x26f   :  { %909 = vrsqrt.f32 %v681_v46 }
 0x270   :  { %911 = vrsqrt.f32 %v679_v48  ;;  %v654_v50 = vpop.xlane.xlu1 %653 }
 0x271   :  { %v682_v52 = vmax.f32 %v654_v50, 1e-24  ;;  %v650_v54 = vpop.xlane.xlu0 %649 }
 0x272   :  { %v680_v55 = vmax.f32 %v650_v54, 1e-24 }
 0x273   :  { %913 = vrsqrt.f32 %v682_v52 }
 0x274   :  { %915 = vrsqrt.f32 %v680_v55 }
 0x275   :  { %v660_v56 = vpop.xlane.xlu0 %659 }
 0x276   :  { %v685_v57 = vmax.f32 %v660_v56, 1e-24  ;;  %v662_v58 = vpop.xlane.xlu1 %661 }
 0x277   :  { %v686_v59 = vmax.f32 %v662_v58, 1e-24 }
 0x278   :  { %917 = vrsqrt.f32 %v685_v57 }
 0x279   :  { %v910_v60 = vpop.eup %909  ;;  %919 = vrsqrt.f32 %v686_v59  ;;  %v656_v61 = vpop.xlane.xlu0 %655 }
 0x27a   :  { %v912_v62 = vpop.eup %911  ;;  %v713_v63 = vmul.f32 %v910_v60, %v1080_v23  ;;  %v683_v0 = vmax.f32 %v656_v61, 1e-24  ;;  %v658_v1 = vpop.xlane.xlu1 %657 }
 0x27b   :  { %v711_v2 = vmul.f32 %v912_v62, %v1082_v25  ;;  %v684_v4 = vmax.f32 %v658_v1, 1e-24 }
 0x27c   :  { %729 = vst [vmem:[%s1265_s9 + $0x10] sm:$0xff] %v713_v63  ;;  %921 = vrsqrt.f32 %v683_v0 }
 0x27d   :  { %v914_v5 = vpop.eup %913  ;;  %727 = vst [vmem:[%s1265_s9] sm:$0xff] %v711_v2  ;;  %923 = vrsqrt.f32 %v684_v4  ;;  %v668_v6 = vpop.xlane.xlu0 %667 }
 0x27e   :  { %v916_v8 = vpop.eup %915  ;;  %v714_v23 = vmul.f32 %v914_v5, %v1084_v26  ;;  %v689_v9 = vmax.f32 %v668_v6, 1e-24  ;;  %v670_v11 = vpop.xlane.xlu1 %669 }
 0x27f   :  { %v712_v25 = vmul.f32 %v916_v8, %v1088_v28  ;;  %v690_v13 = vmax.f32 %v670_v11, 1e-24 }
 0x280   :  { %730 = vst [vmem:[%s1265_s9 + $0x18] sm:$0xff] %v714_v23  ;;  %925 = vrsqrt.f32 %v689_v9 }
 0x281   :  { %728 = vst [vmem:[%s1265_s9 + $0x8] sm:$0xff] %v712_v25  ;;  %927 = vrsqrt.f32 %v690_v13  ;;  %v664_v15 = vpop.xlane.xlu0 %663 }
 0x282   :  { %v918_v16 = vpop.eup %917  ;;  %v687_v17 = vmax.f32 %v664_v15, 1e-24  ;;  %v666_v18 = vpop.xlane.xlu1 %665 }
 0x283   :  { %v920_v26 = vpop.eup %919  ;;  %v717_v19 = vmul.f32 %v918_v16, %v1106_v44  ;;  %v688_v20 = vmax.f32 %v666_v18, 1e-24 }
 0x284   :  { %v718_v28 = vmul.f32 %v920_v26, %v1114_v49  ;;  %929 = vrsqrt.f32 %v687_v17 }
 0x285   :  { %733 = vst [vmem:[%s1265_s9 + $0x30] sm:$0xff] %v717_v19  ;;  %931 = vrsqrt.f32 %v688_v20  ;;  %v672_v21 = vpop.xlane.xlu0 %671 }
 0x286   :  { %v922_v22 = vpop.eup %921  ;;  %734 = vst [vmem:[%s1265_s9 + $0x38] sm:$0xff] %v718_v28  ;;  %v691_v24 = vmax.f32 %v672_v21, 1e-24 }
 0x287   :  { %v924_v27 = vpop.eup %923  ;;  %v715_v29 = vmul.f32 %v922_v22, %v1118_v51  ;;  %v674_v44 = vpop.xlane.xlu1 %673 }
 0x288   :  { %v716_v30 = vmul.f32 %v924_v27, %v1120_v53  ;;  %933 = vrsqrt.f32 %v691_v24  ;;  %v692_v49 = vmax.f32 %v674_v44, 1e-24 }
 0x289   :  { %731 = vst [vmem:[%s1265_s9 + $0x20] sm:$0xff] %v715_v29  ;;  %v676_v31 = vpop.xlane.xlu0 %675 }
 0x28a   :  { %v926_v32 = vpop.eup %925  ;;  %732 = vst [vmem:[%s1265_s9 + $0x28] sm:$0xff] %v716_v30  ;;  %935 = vrsqrt.f32 %v692_v49  ;;  %v693_v33 = vmax.f32 %v676_v31, 1e-24 }
 0x28b   :  { %v928_v35 = vpop.eup %927  ;;  %v721_v51 = vmul.f32 %v926_v32, %v1136_v3  ;;  %v678_v36 = vpop.xlane.xlu1 %677 }
 0x28c   :  { %v722_v53 = vmul.f32 %v928_v35, %v1146_v10  ;;  %937 = vrsqrt.f32 %v693_v33  ;;  %v694_v7 = vmax.f32 %v678_v36, 1e-24 }
 0x28d   :  { %737 = vst [vmem:[%s1265_s9 + $0x50] sm:$0xff] %v721_v51 }
 0x28e   :  { %v930_v39 = vpop.eup %929  ;;  %738 = vst [vmem:[%s1265_s9 + $0x58] sm:$0xff] %v722_v53  ;;  %939 = vrsqrt.f32 %v694_v7 }
 0x28f   :  { %v932_v41 = vpop.eup %931  ;;  %v719_v42 = vmul.f32 %v930_v39, %v1150_v12 }
 0x290   :  { %v720_v3 = vmul.f32 %v932_v41, %v1152_v14 }
 0x291   :  { %735 = vst [vmem:[%s1265_s9 + $0x40] sm:$0xff] %v719_v42 }
 0x292   :  { %v934_v10 = vpop.eup %933  ;;  %736 = vst [vmem:[%s1265_s9 + $0x48] sm:$0xff] %v720_v3 }
 0x293   :  { %v723_v43 = vmul.f32 %v934_v10, %v1173_v34 }
 0x294   :  { %v936_v45 = vpop.eup %935 }
 0x295   :  { %739 = vst [vmem:[%s1265_s9 + $0x60] sm:$0xff] %v723_v43  ;;  %v724_v12 = vmul.f32 %v936_v45, %v1180_v38 }
 0x296   :  { %v938_v46 = vpop.eup %937 }
 0x297   :  { %740 = vst [vmem:[%s1265_s9 + $0x68] sm:$0xff] %v724_v12  ;;  %v725_v14 = vmul.f32 %v938_v46, %v1178_v37 }
 0x298   :  { %v940_v47 = vpop.eup %939 }
 0x299   :  { %741 = vst [vmem:[%s1265_s9 + $0x70] sm:$0xff] %v725_v14  ;;  %v726_v34 = vmul.f32 %v940_v47, %v1184_v40 }
 0x29b   :  { %742 = vst [vmem:[%s1265_s9 + $0x78] sm:$0xff] %v726_v34 }

// kernel: drew_share_gnn_forward.4
= control target key start
LH: loop header
LB: loop body
LE: loop exit
PB: predicated region body
PF: predicated region fallthrough
CT: control target
= control target key end

     0   :  { %s1940_s0 = inlined_call_operand.vmem [shape: s32[2], index: 0, kind: input, shape index: {}]   ;;  %s1941_s2 = inlined_call_operand.vmem [shape: f32[2], index: 2, kind: input, shape index: {}]   ;;  %s1942_s4 = inlined_call_operand.vmem [shape: bf16[3,128,128], index: 4, kind: input, shape index: {}]   ;;  %s1943_s5 = inlined_call_operand.vmem [shape: bf16[3,128,128], index: 5, kind: input, shape index: {}]   ;;  %s1944_s6 = inlined_call_operand.vmem [shape: bf16[128,128], index: 6, kind: input, shape index: {}]   ;;  %s1945_s7 = inlined_call_operand.vmem [shape: f32[1,128], index: 7, kind: input, shape index: {}]   ;;  %s1946_s8 = inlined_call_operand.vmem [shape: f32[128,128], index: 8, kind: input, shape index: {}]   ;;  %s1947_s9 = inlined_call_operand.vmem [shape: f32[128,128], index: 9, kind: output, shape index: {}]   ;;  %s1948_s1 = inlined_call_operand.vmem [shape: s32[2], index: 1, kind: input, shape index: {}]   ;;  %s1949_s3 = inlined_call_operand.<no memory space> [shape: f32[1], index: 3, kind: input, shape index: {}]  }
   0x1   :  { %s14_s11 = sshll.u32 %s1940_s0, 4  ;;  %s18_s14 = sshll.u32 %s1948_s1, 4  ;;  %s15_s11 = int_to_ptr.vmem [resolvable:$true] %s14_s11  ;;  %s19_s14 = int_to_ptr.vmem [resolvable:$true] %s18_s14 }
   0x2   :  { %s1485_s15 = scalar_lea.vmem %s15_s11, 16  ;;  %p1490_p1 = scmp.lt.s32.totalorder %s15_s11, %s15_s11 }
   0x3   :  { %p1486_p0 = scmp.ne.s32.totalorder %s15_s11, %s1485_s15  ;;  %p1491_p2 = scmp.lt.s32.totalorder %s1485_s15, %s1485_s15 }
   0x5   :  { %p1492_p3 = por %p1491_p2, %p1490_p1 }
   0x7   :  { %p1493_p4 = pnand %p1492_p3, %p1486_p0 }
   0x9   :  { %1496 = shalt.err (!%p1493_p4)  }
   0xa   :  { %s1554_s16 = smov [#allocation4]   ;;  %s1497_s17 = scalar_lea.vmem %s19_s14, 16 }
   0xb   :  { %17 = dma.vmem_to_smem %s15_s11, 16, %s1554_s16, [#allocation3] }
   0xc   :  { %p1498_p5 = scmp.ne.s32.totalorder %s19_s14, %s1497_s17  ;;  %p1502_p6 = scmp.lt.s32.totalorder %s19_s14, %s19_s14 }
   0xd   :  { %p1503_p7 = scmp.lt.s32.totalorder %s1497_s17, %s1497_s17 }
   0xf   :  { %p1504_p8 = por %p1503_p7, %p1502_p6 }
  0x11   :  { %p1505_p9 = pnand %p1504_p8, %p1498_p5 }
  0x13   :  { %1508 = shalt.err (!%p1505_p9)  }
  0x14   :  { %s1555_s0 = smov [#allocation5]   ;;  %22 = sst [smem:[#allocation6]] %s1949_s3 }
  0x15   :  { %21 = dma.vmem_to_smem %s19_s14, 16, %s1555_s0, [#allocation3] }
  0x16   :  { %1536 = dma.done.wait [#allocation3], 32 }
  0x17   :  { %1537 = vsyncadd [#allocation3], 4294967264 }
  0x18   :  { %24 = sfence }
  0x19   :  { %25 = vsyncpa [#allocation8], 0  ;;  %s1617_s19 = smov 0   ;;  %s1619_s20 = smov 0  }
  0x1a   :  { %s1621_s21 = smov 0  }
  0x1b LB: > { %s1218_s3 = sadd.s32 4294967295, %s1552_s21   ;;  %s46_s22 = sadd.s32 1, %s1548_s20  ;;  %s1552_s21 = sphi %s1621_s21, %s31_s21   ;;  %s1548_s20 = sphi %s1619_s20, %s1953_s20   ;;  %s1544_s19 = sphi %s1617_s19, %s1952_s19  }
  0x1c   : > { %p48_p10 = scmp.ge.s32.totalorder %s46_s22, 2  ;;  %p1219_p11 = scmp.ge.s32.totalorder %s1552_s21, 1 }
  0x1d   : > { %p253_p12 = scmp.lt.s32.totalorder %s1552_s21, 3  ;;  %p1642_p0 = scmp.eq.s32.totalorder %s1218_s3, 0 }
  0x1e   : > { %s1955_s22 = smov (%p48_p10, %s46_s22), 0  ;;  %s266_s27 = sshll.u32 %s1941_s2, 4  ;;  %s267_s27 = int_to_ptr.vmem [resolvable:$true] %s266_s27 }
  0x1f   : > { %p1638_p13 = pnand %p1219_p11, %p253_p12  ;;  %s1509_s28 = scalar_lea.vmem %s267_s27, 16 }
  0x20   : > { %p1510_p3 = scmp.ne.s32.totalorder %s267_s27, %s1509_s28  ;;  %p1517_p7 = scmp.lt.s32.totalorder %s267_s27, %s267_s27 }
  0x21   : > { %p1395_p1 = pneg %p1638_p13  ;;  %p1518_p8 = scmp.lt.s32.totalorder %s1509_s28, %s1509_s28 }
  0x23   : > { %p1396_p2 = pnand %p1642_p0, %p1395_p1  ;;  %p1519_p9 = por %p1518_p8, %p1517_p7 }
  0x25   : > { %p1511_p4 = pneg %p1396_p2 }
  0x27   : > { %p1512_p5 = pnand %p1511_p4, %p1510_p3 }
  0x29   : > { %p1513_p6 = pneg %p1512_p5 }
  0x2b   : > { %p1520_p10 = pnand %p1519_p9, %p1513_p6 }
  0x2d   : > { %1523 = shalt.err (!%p1520_p10)
}
  0x2e   : > { %s1556_s29 = smov [#allocation7]   ;;  %330 = sbr.rel (%p1638_p13) target bundleno = 760 (0x2f8), region = 48 }
  0x2f   : > { %1398 = dma.vmem_to_smem (!%p1396_p2), %s267_s27, 16, %s1556_s29, [#allocation8]  }
  0x35   : > { %1539 = dma.done.wait (%p1642_p0), [#allocation8], 16  }
  0x36   : > { %1541 = vsyncadd (%p1642_p0), [#allocation8], 4294967280 }
  0x37   : > { %336 = sfence }
  0x38   : > { %s386_s30 = sld [smem:[#allocation4 + %s1544_s19]]  ;;  %p426_p11 = scmp.eq.s32.totalorder %s1544_s19, 0 }
  0x39   : > { %s401_s10 = sld [smem:[#allocation5 + %s1544_s19]]  ;;  %v1557_v0 = vmov (%p426_p11), 0.0  }
  0x3a   : > { %432 = vst [vmem:[#allocation2] sm:$0xff] (%p426_p11), %v1557_v0  ;;  %433 = vst [vmem:[#allocation2 + $0x8] sm:$0xff] (%p426_p11), %v1557_v0 }
  0x3b   : > { %434 = vst [vmem:[#allocation2 + $0x10] sm:$0xff] (%p426_p11), %v1557_v0  ;;  %435 = vst [vmem:[#allocation2 + $0x18] sm:$0xff] (%p426_p11), %v1557_v0 }
  0x3c   : > { %436 = vst [vmem:[#allocation2 + $0x20] sm:$0xff] (%p426_p11), %v1557_v0  ;;  %437 = vst [vmem:[#allocation2 + $0x28] sm:$0xff] (%p426_p11), %v1557_v0 }
  0x3d   : > { %431 = sbr.rel (!%p426_p11) target bundleno = 68 (0x44), region = 56  ;;  %438 = vst [vmem:[#allocation2 + $0x30] sm:$0xff] (%p426_p11), %v1557_v0  ;;  %439 = vst [vmem:[#allocation2 + $0x38] sm:$0xff] (%p426_p11), %v1557_v0 }
  0x3e   : > { %p388_p12 = scmp.lt.s32.totalorder %s386_s30, 2  ;;  %440 = vst [vmem:[#allocation2 + $0x40] sm:$0xff] (%p426_p11), %v1557_v0  ;;  %441 = vst [vmem:[#allocation2 + $0x48] sm:$0xff] (%p426_p11), %v1557_v0 }
  0x3f   : > { %p403_p1 = scmp.lt.s32.totalorder %s401_s10, 2  ;;  %442 = vst [vmem:[#allocation2 + $0x50] sm:$0xff] (%p426_p11), %v1557_v0  ;;  %443 = vst [vmem:[#allocation2 + $0x58] sm:$0xff] (%p426_p11), %v1557_v0 }
  0x40   : > { %s1957_s30 = smov (!%p388_p12, %s386_s30), 2  ;;  %444 = vst [vmem:[#allocation2 + $0x60] sm:$0xff] (%p426_p11), %v1557_v0  ;;  %445 = vst [vmem:[#allocation2 + $0x68] sm:$0xff] (%p426_p11), %v1557_v0 }
  0x41   : > { %s1959_s10 = smov (!%p403_p1, %s401_s10), 2  ;;  %s1259_s11 = sshll.u32 %s1957_s30, 6  ;;  %446 = vst [vmem:[#allocation2 + $0x70] sm:$0xff] (%p426_p11), %v1557_v0  ;;  %447 = vst [vmem:[#allocation2 + $0x78] sm:$0xff] (%p426_p11), %v1557_v0 }
  0x42   : > { %s1665_s14 = scalar_lea.vmem %s1942_s4, %s1259_s11  ;;  %s1260_s15 = sshll.u32 %s1959_s10, 6 }
  0x43   : > { %s1670_s0 = scalar_lea.vmem %s1943_s5, %s1260_s15 }
  0x44 PF: > { %v1429_v1 = vld [vmem:[%s1670_s0] sm:$0xff]   ;;  %v1430_v2 = vld [vmem:[%s1670_s0 + $0x8] sm:$0xff]   ;;  %v1431_v3 = vld [vmem:[%s1670_s0 + $0x10] sm:$0xff]   ;;  %p739_p13 = scmp.eq.s32.totalorder %s1544_s19, 1  ;;  %s689_s1 = sld [smem:[#allocation7 + %s1544_s19]] }
  0x45   : > { %1295 = vmatprep.subr.bf16.mxu0 %v1429_v1  ;;  %1359 = vmatprep.subr.bf16.mxu1 %v1429_v1  ;;  %v1432_v4 = vld [vmem:[%s1670_s0 + $0x18] sm:$0xff]   ;;  %v1437_v5 = vld [vmem:[%s1665_s14] sm:$0xff]   ;;  %v1434_v8 = vld [vmem:[%s1670_s0 + $0x28] sm:$0xff]   ;;  %s784_s15 = sld [smem:[#allocation6]] (%p739_p13) }
  0x46   : > { %1296 = vmatpush3.bf16.msra.mxu0 %v1429_v1  ;;  %1367 = vmatpush3.bf16.msra.mxu1 %v1429_v1  ;;  %v1438_v6 = vld [vmem:[%s1665_s14 + $0x20] sm:$0xff]   ;;  %v1435_v9 = vld [vmem:[%s1670_s0 + $0x30] sm:$0xff]   ;;  %v1436_v10 = vld [vmem:[%s1670_s0 + $0x38] sm:$0xff]  }
  0x47   : > { %1297 = vmatprep.subr.bf16.mxu0 %v1430_v2  ;;  %1360 = vmatprep.subr.bf16.mxu1 %v1430_v2  ;;  %v1433_v7 = vld [vmem:[%s1670_s0 + $0x20] sm:$0xff]   ;;  %v1439_v11 = vld [vmem:[%s1665_s14 + $0x8] sm:$0xff]   ;;  %v1441_v13 = vld [vmem:[%s1665_s14 + $0x10] sm:$0xff]  }
  0x48   : > { %1311 = vmatprep.mubr.bf16.mxu0 %v1437_v5  ;;  %1319 = vmatprep.mubr.bf16.mxu1 %v1438_v6  ;;  %v1440_v12 = vld [vmem:[%s1665_s14 + $0x28] sm:$0xff]   ;;  %v1442_v14 = vld [vmem:[%s1665_s14 + $0x30] sm:$0xff]   ;;  %v1443_v15 = vld [vmem:[%s1665_s14 + $0x18] sm:$0xff]  }
  0x49   : > { %v1444_v16 = vld [vmem:[%s1665_s14 + $0x38] sm:$0xff]   ;;  %v675_v19 = vld [vmem:[#allocation2 + $0x10] sm:$0xff]  ;;  %v673_v25 = vld [vmem:[#allocation2] sm:$0xff] }
  0x4a   : > { %1298 = vmatpush3.bf16.msra.mxu0 %v1430_v2  ;;  %1368 = vmatpush3.bf16.msra.mxu1 %v1430_v2  ;;  %v1690_v17 = vstv %s689_s1  ;;  %v683_v21 = vld [vmem:[#allocation2 + $0x50] sm:$0xff]  ;;  %v681_v27 = vld [vmem:[#allocation2 + $0x40] sm:$0xff]  ;;  %v676_v31 = vld [vmem:[#allocation2 + $0x18] sm:$0xff] }
  0x4b   : > { %1299 = vmatprep.subr.bf16.mxu0 %v1431_v3  ;;  %1361 = vmatprep.subr.bf16.mxu1 %v1431_v3  ;;  %v684_v33 = vld [vmem:[#allocation2 + $0x58] sm:$0xff]  ;;  %v674_v39 = vld [vmem:[#allocation2 + $0x8] sm:$0xff]  ;;  %v679_v51 = vld [vmem:[#allocation2 + $0x30] sm:$0xff] }
  0x4c   : > { %v682_v41 = vld [vmem:[#allocation2 + $0x48] sm:$0xff]  ;;  %v687_v53 = vld [vmem:[#allocation2 + $0x70] sm:$0xff]  ;;  %v677_v57 = vld [vmem:[#allocation2 + $0x20] sm:$0xff] }
  0x4d   : > { %v685_v59 = vld [vmem:[#allocation2 + $0x60] sm:$0xff]  ;;  %v680_v63 = vld [vmem:[#allocation2 + $0x38] sm:$0xff] }
  0x4e   : > { %1300 = vmatpush3.bf16.msra.mxu0 %v1431_v3  ;;  %1369 = vmatpush3.bf16.msra.mxu1 %v1431_v3  ;;  %v688_v1 = vld [vmem:[#allocation2 + $0x78] sm:$0xff] }
  0x4f   : > { %1301 = vmatprep.subr.bf16.mxu0 %v1432_v4  ;;  %1362 = vmatprep.subr.bf16.mxu1 %v1432_v4 }
  0x52   : > { %1302 = vmatpush3.bf16.msra.mxu0 %v1432_v4  ;;  %1370 = vmatpush3.bf16.msra.mxu1 %v1432_v4 }
  0x53   : > { %1303 = vmatprep.subr.bf16.mxu0 %v1433_v7  ;;  %1363 = vmatprep.subr.bf16.mxu1 %v1433_v7 }
  0x56   : > { %1304 = vmatpush3.bf16.msra.mxu0 %v1433_v7  ;;  %1371 = vmatpush3.bf16.msra.mxu1 %v1433_v7  ;;  %v678_v7 = vld [vmem:[#allocation2 + $0x28] sm:$0xff] }
  0x57   : > { %1305 = vmatprep.subr.bf16.mxu0 %v1434_v8  ;;  %1364 = vmatprep.subr.bf16.mxu1 %v1434_v8 }
  0x5a   : > { %1306 = vmatpush3.bf16.msra.mxu0 %v1434_v8  ;;  %1372 = vmatpush3.bf16.msra.mxu1 %v1434_v8 }
  0x5b   : > { %1307 = vmatprep.subr.bf16.mxu0 %v1435_v9  ;;  %1365 = vmatprep.subr.bf16.mxu1 %v1435_v9 }
  0x5e   : > { %1308 = vmatpush3.bf16.msra.mxu0 %v1435_v9  ;;  %1373 = vmatpush3.bf16.msra.mxu1 %v1435_v9  ;;  %v686_v9 = vld [vmem:[#allocation2 + $0x68] sm:$0xff] }
  0x5f   : > { %1309 = vmatprep.subr.bf16.mxu0 %v1436_v10  ;;  %1366 = vmatprep.subr.bf16.mxu1 %v1436_v10 }
  0x62   : > { %1310 = vmatpush3.bf16.msra.mxu0 %v1436_v10  ;;  %1374 = vmatpush3.bf16.msra.mxu1 %v1436_v10 }
  0x65   : > { %1312 = vmatmul.mubr.bf16.vlgmr.msra.gmra.mrb[0].mxu0 %v1439_v11  ;;  %1320 = vmatmul.mubr.bf16.vlgmr.msra.gmra.mrb[0].mxu1 %v1440_v12 }
  0x66   : > { %1315 = vmatprep.mubr.bf16.mxu0 %v1441_v13  ;;  %1323 = vmatprep.mubr.bf16.mxu1 %v1442_v14 }
  0x6d   : > { %1316 = vmatmul.mubr.bf16.gmra.mrb[4].mxu0 %v1443_v15  ;;  %1324 = vmatmul.mubr.bf16.gmra.mrb[4].mxu1 %v1444_v16 }
 0x138   : > { %v1313_v18 = vpop.f32.mrb[0].mxu0  ;;  %v1321_v20 = vpop.f32.mrb[0].mxu1 }
 0x139   : > { %v693_v22 = vmul.f32 %v1313_v18, %v1690_v17  ;;  %v701_v23 = vmul.f32 %v1321_v20, %v1690_v17  ;;  %v610_v24 = vpop.f32.mrb[1].mxu0  ;;  %v642_v26 = vpop.f32.mrb[1].mxu1  ;;  %v1447_v20 = vld [vmem:[%s1944_s6 + $0x10] sm:$0xff] (%p739_p13)  }
 0x13a   : > { %v691_v28 = vmul.f32 %v1690_v17, %v610_v24  ;;  %v699_v29 = vmul.f32 %v1690_v17, %v642_v26  ;;  %v1314_v30 = vpop.f32.mrb[2].mxu0  ;;  %v1322_v32 = vpop.f32.mrb[2].mxu1 }
 0x13b   : > { %v709_v34 = vadd.f32 %v693_v22, %v675_v19  ;;  %v717_v35 = vadd.f32 %v701_v23, %v683_v21  ;;  %v694_v36 = vmul.f32 %v1314_v30, %v1690_v17  ;;  %v702_v37 = vmul.f32 %v1322_v32, %v1690_v17  ;;  %v613_v38 = vpop.f32.mrb[3].mxu0  ;;  %v645_v40 = vpop.f32.mrb[3].mxu1  ;;  %v1445_v19 = vld [vmem:[%s1944_s6] sm:$0xff] (%p739_p13)   ;;  %v1448_v21 = vld [vmem:[%s1944_s6 + $0x18] sm:$0xff] (%p739_p13)   ;;  %v1451_v30 = vld [vmem:[%s1944_s6 + $0x30] sm:$0xff] (%p739_p13)  }
 0x13c   : > { %v707_v42 = vadd.f32 %v691_v28, %v673_v25  ;;  %v715_v43 = vadd.f32 %v699_v29, %v681_v27  ;;  %v692_v44 = vmul.f32 %v1690_v17, %v613_v38  ;;  %v700_v45 = vmul.f32 %v1690_v17, %v645_v40  ;;  %1327 = vmatprep.subr.bf16.mxu0 (%p739_p13), %v1445_v19  ;;  %v1449_v28 = vld [vmem:[%s1944_s6 + $0x20] sm:$0xff] (%p739_p13)   ;;  %v1450_v29 = vld [vmem:[%s1944_s6 + $0x28] sm:$0xff] (%p739_p13)  }
 0x13d   : > { %725 = vst [vmem:[#allocation2 + $0x10] sm:$0xff] %v709_v34  ;;  %733 = vst [vmem:[#allocation2 + $0x50] sm:$0xff] %v717_v35  ;;  %v710_v46 = vadd.f32 %v694_v36, %v676_v31  ;;  %v718_v47 = vadd.f32 %v702_v37, %v684_v33  ;;  %1375 = vmatprep.subr.bf16.mxu1 (%p739_p13), %v1445_v19  ;;  %1328 = vmatpush3.bf16.msra.mxu0 (%p739_p13), %v1445_v19  ;;  %v1452_v31 = vld [vmem:[%s1944_s6 + $0x38] sm:$0xff] (%p739_p13)  }
 0x13e   : > { %723 = vst [vmem:[#allocation2] sm:$0xff] %v707_v42  ;;  %731 = vst [vmem:[#allocation2 + $0x40] sm:$0xff] %v715_v43  ;;  %v708_v48 = vadd.f32 %v692_v44, %v674_v39  ;;  %v716_v49 = vadd.f32 %v700_v45, %v682_v41  ;;  %1383 = vmatpush3.bf16.msra.mxu1 (%p739_p13), %v1445_v19 }
 0x13f   : > { %726 = vst [vmem:[#allocation2 + $0x18] sm:$0xff] %v710_v46  ;;  %734 = vst [vmem:[#allocation2 + $0x58] sm:$0xff] %v718_v47 }
 0x140   : > { %724 = vst [vmem:[#allocation2 + $0x8] sm:$0xff] %v708_v48  ;;  %732 = vst [vmem:[#allocation2 + $0x48] sm:$0xff] %v716_v49  ;;  %v1317_v50 = vpop.f32.mrb[4].mxu0  ;;  %v1325_v52 = vpop.f32.mrb[4].mxu1 }
 0x141   : > { %v697_v54 = vmul.f32 %v1317_v50, %v1690_v17  ;;  %v705_v55 = vmul.f32 %v1325_v52, %v1690_v17  ;;  %v626_v56 = vpop.f32.mrb[5].mxu0  ;;  %v658_v58 = vpop.f32.mrb[5].mxu1  ;;  %v789_v50 = vlaneseq (%p739_p13)  ;;  %v785_v52 = vld [vmem:[%s1945_s7] sm:$0x1] (%p739_p13) }
 0x142   : > { %v695_v60 = vmul.f32 %v1690_v17, %v626_v56  ;;  %v703_v61 = vmul.f32 %v1690_v17, %v658_v58  ;;  %v1318_v62 = vpop.f32.mrb[6].mxu0  ;;  %v1326_v0 = vpop.f32.mrb[6].mxu1  ;;  %743 = sbr.rel (!%p739_p13) target bundleno = 760 (0x2f8), region = 60 }
 0x143   : > { %v713_v2 = vadd.f32 %v697_v54, %v679_v51  ;;  %v721_v3 = vadd.f32 %v705_v55, %v687_v53  ;;  %v698_v4 = vmul.f32 %v1318_v62, %v1690_v17  ;;  %v706_v5 = vmul.f32 %v1326_v0, %v1690_v17  ;;  %v629_v6 = vpop.f32.mrb[7].mxu0  ;;  %v661_v8 = vpop.f32.mrb[7].mxu1 }
 0x144   : > { %v711_v10 = vadd.f32 %v695_v60, %v677_v57  ;;  %v719_v11 = vadd.f32 %v703_v61, %v685_v59  ;;  %v696_v12 = vmul.f32 %v1690_v17, %v629_v6  ;;  %v704_v13 = vmul.f32 %v1690_v17, %v661_v8  ;;  %v1446_v17 = vld [vmem:[%s1944_s6 + $0x8] sm:$0xff] (%p739_p13)   ;;  %v746_v32 = vld [vmem:[#allocation2 + $0x10] sm:$0xff] (%p739_p13) }
 0x145   : > { %729 = vst [vmem:[#allocation2 + $0x30] sm:$0xff] %v713_v2  ;;  %737 = vst [vmem:[#allocation2 + $0x70] sm:$0xff] %v721_v3  ;;  %v714_v14 = vadd.f32 %v698_v4, %v680_v63  ;;  %v722_v15 = vadd.f32 %v706_v5, %v688_v1  ;;  %1329 = vmatprep.subr.bf16.mxu0 (%p739_p13), %v1446_v17  ;;  %1376 = vmatprep.subr.bf16.mxu1 (%p739_p13), %v1446_v17  ;;  %v744_v22 = vld [vmem:[#allocation2] sm:$0xff] (%p739_p13)  ;;  %v754_v34 = vld [vmem:[#allocation2 + $0x50] sm:$0xff] (%p739_p13)  ;;  %v790_v51 = vshrl.u32 (%p739_p13), %v789_v50, 7 }
 0x146   : > { %727 = vst [vmem:[#allocation2 + $0x20] sm:$0xff] %v711_v10  ;;  %735 = vst [vmem:[#allocation2 + $0x60] sm:$0xff] %v719_v11  ;;  %v712_v16 = vadd.f32 %v696_v12, %v678_v7  ;;  %v720_v18 = vadd.f32 %v704_v13, %v686_v9  ;;  %1330 = vmatpush3.bf16.msra.mxu0 (%p739_p13), %v1446_v17  ;;  %1384 = vmatpush3.bf16.msra.mxu1 (%p739_p13), %v1446_v17  ;;  %v752_v24 = vld [vmem:[#allocation2 + $0x40] sm:$0xff] (%p739_p13)  ;;  %v747_v33 = vld [vmem:[#allocation2 + $0x18] sm:$0xff] (%p739_p13)  ;;  %v786_v53 = vstv (%p739_p13), %s784_s15 }
 0x147   : > { %730 = vst [vmem:[#allocation2 + $0x38] sm:$0xff] %v714_v14  ;;  %738 = vst [vmem:[#allocation2 + $0x78] sm:$0xff] %v722_v15  ;;  %1331 = vmatprep.subr.bf16.mxu0 (%p739_p13), %v1447_v20  ;;  %1377 = vmatprep.subr.bf16.mxu1 (%p739_p13), %v1447_v20  ;;  %v745_v23 = vld [vmem:[#allocation2 + $0x8] sm:$0xff] (%p739_p13)  ;;  %v755_v35 = vld [vmem:[#allocation2 + $0x58] sm:$0xff] (%p739_p13)  ;;  %v761_v40 = vpack.c.bf16 (%p739_p13), %v747_v33, %v746_v32  ;;  %v787_v54 = vmul.f32 (%p739_p13), %v786_v53, %v785_v52  ;;  %v791_v55 = vsub.s32 (%p739_p13), 0, %v790_v51 }
 0x148   : > { %728 = vst [vmem:[#allocation2 + $0x28] sm:$0xff] %v712_v16  ;;  %736 = vst [vmem:[#allocation2 + $0x68] sm:$0xff] %v720_v18  ;;  %v760_v25 = vpack.c.bf16 (%p739_p13), %v745_v23, %v744_v22  ;;  %v753_v26 = vld [vmem:[#allocation2 + $0x48] sm:$0xff] (%p739_p13)  ;;  %v765_v41 = vpack.c.bf16 (%p739_p13), %v755_v35, %v754_v34  ;;  %v949_v3 = vld [vmem:[%s1946_s8 + $0x50] sm:$0xff] (%p739_p13) }
 0x149   : > { %v764_v27 = vpack.c.bf16 %v753_v26, %v752_v24  ;;  %v1737_v56 = vrot.slane %v787_v54, %v791_v55  ;;  %v941_v4 = vld [vmem:[%s1946_s8 + $0x10] sm:$0xff]  ;;  %v939_v11 = vld [vmem:[%s1946_s8] sm:$0xff]  ;;  %v942_v13 = vld [vmem:[%s1946_s8 + $0x18] sm:$0xff] }
 0x14a   : > { %1332 = vmatpush3.bf16.msra.mxu0 %v1447_v20  ;;  %1385 = vmatpush3.bf16.msra.mxu1 %v1447_v20  ;;  %v947_v22 = vld [vmem:[%s1946_s8 + $0x40] sm:$0xff]  ;;  %v950_v24 = vld [vmem:[%s1946_s8 + $0x58] sm:$0xff]  ;;  %v945_v53 = vld [vmem:[%s1946_s8 + $0x30] sm:$0xff] }
 0x14b   : > { %1333 = vmatprep.subr.bf16.mxu0 %v1448_v21  ;;  %1378 = vmatprep.subr.bf16.mxu1 %v1448_v21  ;;  %v946_v54 = vld [vmem:[%s1946_s8 + $0x38] sm:$0xff] }
 0x14c   : > { %1343 = vmatprep.mubr.bf16.mxu0 %v760_v25  ;;  %1351 = vmatprep.mubr.bf16.mxu1 %v764_v27  ;;  %v750_v44 = vld [vmem:[#allocation2 + $0x30] sm:$0xff] }
 0x14d   : > { %v748_v36 = vld [vmem:[#allocation2 + $0x20] sm:$0xff]  ;;  %v758_v46 = vld [vmem:[#allocation2 + $0x70] sm:$0xff] }
 0x14e   : > { %1334 = vmatpush3.bf16.msra.mxu0 %v1448_v21  ;;  %1386 = vmatpush3.bf16.msra.mxu1 %v1448_v21  ;;  %v756_v38 = vld [vmem:[#allocation2 + $0x60] sm:$0xff]  ;;  %v751_v45 = vld [vmem:[#allocation2 + $0x38] sm:$0xff] }
 0x14f   : > { %1335 = vmatprep.subr.bf16.mxu0 %v1449_v28  ;;  %1379 = vmatprep.subr.bf16.mxu1 %v1449_v28  ;;  %v749_v37 = vld [vmem:[#allocation2 + $0x28] sm:$0xff]  ;;  %v759_v47 = vld [vmem:[#allocation2 + $0x78] sm:$0xff]  ;;  %v763_v48 = vpack.c.bf16 %v751_v45, %v750_v44 }
 0x150   : > { %v757_v39 = vld [vmem:[#allocation2 + $0x68] sm:$0xff]  ;;  %v762_v42 = vpack.c.bf16 %v749_v37, %v748_v36  ;;  %v767_v49 = vpack.c.bf16 %v759_v47, %v758_v46 }
 0x151   : > { %v766_v43 = vpack.c.bf16 %v757_v39, %v756_v38  ;;  %v940_v37 = vld [vmem:[%s1946_s8 + $0x8] sm:$0xff] }
 0x152   : > { %1336 = vmatpush3.bf16.msra.mxu0 %v1449_v28  ;;  %1387 = vmatpush3.bf16.msra.mxu1 %v1449_v28  ;;  %v948_v38 = vld [vmem:[%s1946_s8 + $0x48] sm:$0xff] }
 0x153   : > { %1337 = vmatprep.subr.bf16.mxu0 %v1450_v29  ;;  %1380 = vmatprep.subr.bf16.mxu1 %v1450_v29 }
 0x156   : > { %1338 = vmatpush3.bf16.msra.mxu0 %v1450_v29  ;;  %1388 = vmatpush3.bf16.msra.mxu1 %v1450_v29 }
 0x157   : > { %1339 = vmatprep.subr.bf16.mxu0 %v1451_v30  ;;  %1381 = vmatprep.subr.bf16.mxu1 %v1451_v30 }
 0x15a   : > { %1340 = vmatpush3.bf16.msra.mxu0 %v1451_v30  ;;  %1389 = vmatpush3.bf16.msra.mxu1 %v1451_v30 }
 0x15b   : > { %1341 = vmatprep.subr.bf16.mxu0 %v1452_v31  ;;  %1382 = vmatprep.subr.bf16.mxu1 %v1452_v31 }
 0x15e   : > { %1342 = vmatpush3.bf16.msra.mxu0 %v1452_v31  ;;  %1390 = vmatpush3.bf16.msra.mxu1 %v1452_v31 }
 0x161   : > { %1344 = vmatmul.mubr.bf16.vlgmr.msra.gmra.mrb[0].mxu0 %v761_v40  ;;  %1352 = vmatmul.mubr.bf16.vlgmr.msra.gmra.mrb[0].mxu1 %v765_v41 }
 0x162   : > { %1347 = vmatprep.mubr.bf16.mxu0 %v762_v42  ;;  %1355 = vmatprep.mubr.bf16.mxu1 %v766_v43 }
 0x169   : > { %1348 = vmatmul.mubr.bf16.gmra.mrb[4].mxu0 %v763_v48  ;;  %1356 = vmatmul.mubr.bf16.gmra.mrb[4].mxu1 %v767_v49 }
 0x234   : > { %v1345_v57 = vpop.f32.mrb[0].mxu0  ;;  %v1353_v58 = vpop.f32.mrb[0].mxu1 }
 0x235   : > { %v885_v59 = vadd.f32 %v1345_v57, %v1737_v56  ;;  %v917_v60 = vadd.f32 %v1353_v58, %v1737_v56  ;;  %v876_v61 = vpop.f32.mrb[1].mxu0  ;;  %v908_v62 = vpop.f32.mrb[1].mxu1 }
 0x236   : > { %v877_v63 = vadd.f32 %v876_v61, %v1737_v56  ;;  %v909_v0 = vadd.f32 %v908_v62, %v1737_v56  ;;  %v1346_v1 = vpop.f32.mrb[2].mxu0  ;;  %v1354_v2 = vpop.f32.mrb[2].mxu1  ;;  %v943_v61 = vld [vmem:[%s1946_s8 + $0x20] sm:$0xff] }
 0x237   : > { %v957_v5 = vmax.f32 %v885_v59, 0.0  ;;  %v965_v6 = vmax.f32 %v917_v60, 0.0  ;;  %v888_v7 = vadd.f32 %v1346_v1, %v1737_v56  ;;  %v920_v8 = vadd.f32 %v1354_v2, %v1737_v56  ;;  %v879_v9 = vpop.f32.mrb[3].mxu0  ;;  %v911_v10 = vpop.f32.mrb[3].mxu1  ;;  %v944_v1 = vld [vmem:[%s1946_s8 + $0x28] sm:$0xff] }
 0x238   : > { %v955_v12 = vmax.f32 %v877_v63, 0.0  ;;  %v963_v18 = vmax.f32 %v909_v0, 0.0  ;;  %v880_v17 = vadd.f32 %v879_v9, %v1737_v56  ;;  %v912_v20 = vadd.f32 %v911_v10, %v1737_v56  ;;  %v951_v10 = vld [vmem:[%s1946_s8 + $0x60] sm:$0xff] }
 0x239   : > { %v958_v14 = vmax.f32 %v888_v7, 0.0  ;;  %v1757_v15 = vadd.f32 %v965_v6, %v949_v3  ;;  %v1759_v16 = vadd.f32 %v957_v5, %v941_v4  ;;  %v966_v19 = vmax.f32 %v920_v8, 0.0 }
 0x23a   : > { %v1763_v21 = vadd.f32 %v955_v12, %v939_v11  ;;  %v1777_v31 = vadd.f32 %v963_v18, %v947_v22  ;;  %v956_v33 = vmax.f32 %v880_v17, 0.0  ;;  %v964_v34 = vmax.f32 %v912_v20, 0.0  ;;  %v952_v11 = vld [vmem:[%s1946_s8 + $0x68] sm:$0xff]  ;;  %v953_v17 = vld [vmem:[%s1946_s8 + $0x70] sm:$0xff]  ;;  %v954_v20 = vld [vmem:[%s1946_s8 + $0x78] sm:$0xff] }
 0x23b   : > { %v1768_v23 = vadd.f32 %v958_v14, %v942_v13  ;;  %v997_v25 = vmul.f32 %v1757_v15, %v1757_v15  ;;  %v989_v26 = vmul.f32 %v1759_v16, %v1759_v16  ;;  %v1779_v32 = vadd.f32 %v966_v19, %v950_v24 }
 0x23c   : > { %v1349_v27 = vpop.f32.mrb[4].mxu0  ;;  %v1357_v28 = vpop.f32.mrb[4].mxu1  ;;  %v987_v42 = vmul.f32 %v1763_v21, %v1763_v21  ;;  %v1793_v45 = vadd.f32 %v956_v33, %v940_v37  ;;  %v1795_v46 = vadd.f32 %v964_v34, %v948_v38  ;;  %v995_v48 = vmul.f32 %v1777_v31, %v1777_v31 }
 0x23d   : > { %1023 = vadd.xlane.f32.xlu0 %v997_v25  ;;  %1007 = vadd.xlane.f32.xlu1 %v989_v26  ;;  %v892_v29 = vpop.f32.mrb[5].mxu0  ;;  %v924_v30 = vpop.f32.mrb[5].mxu1  ;;  %v901_v39 = vadd.f32 %v1349_v27, %v1737_v56  ;;  %v990_v40 = vmul.f32 %v1768_v23, %v1768_v23  ;;  %v998_v52 = vmul.f32 %v1779_v32, %v1779_v32 }
 0x23e   : > { %v1350_v35 = vpop.f32.mrb[6].mxu0  ;;  %v1358_v36 = vpop.f32.mrb[6].mxu1  ;;  %v893_v47 = vadd.f32 %v892_v29, %v1737_v56  ;;  %v925_v57 = vadd.f32 %v924_v30, %v1737_v56  ;;  %v996_v58 = vmul.f32 %v1795_v46, %v1795_v46  ;;  %v988_v59 = vmul.f32 %v1793_v45, %v1793_v45 }
 0x23f   : > { %v904_v41 = vadd.f32 %v1350_v35, %v1737_v56  ;;  %v895_v43 = vpop.f32.mrb[7].mxu0  ;;  %v927_v44 = vpop.f32.mrb[7].mxu1  ;;  %v961_v49 = vmax.f32 %v901_v39, 0.0  ;;  %v933_v3 = vadd.f32 %v1357_v28, %v1737_v56  ;;  %v936_v5 = vadd.f32 %v1358_v36, %v1737_v56 }
 0x240   : > { %v896_v51 = vadd.f32 %v895_v43, %v1737_v56  ;;  %v959_v55 = vmax.f32 %v893_v47, 0.0  ;;  %v928_v0 = vadd.f32 %v927_v44, %v1737_v56  ;;  %v967_v4 = vmax.f32 %v925_v57, 0.0 }
 0x241   : > { %1009 = vadd.xlane.f32.xlu1 %v990_v40  ;;  %1003 = vadd.xlane.f32.xlu0 %v987_v42  ;;  %v962_v50 = vmax.f32 %v904_v41, 0.0  ;;  %v1814_v60 = vadd.f32 %v961_v49, %v945_v53  ;;  %v969_v56 = vmax.f32 %v933_v3, 0.0  ;;  %v970_v12 = vmax.f32 %v936_v5, 0.0 }
 0x242   : > { %v960_v63 = vmax.f32 %v896_v51, 0.0  ;;  %v1825_v2 = vadd.f32 %v959_v55, %v943_v61  ;;  %v968_v7 = vmax.f32 %v928_v0, 0.0  ;;  %v1841_v13 = vadd.f32 %v967_v4, %v951_v10 }
 0x243   : > { %v1819_v62 = vadd.f32 %v962_v50, %v946_v54  ;;  %v993_v9 = vmul.f32 %v1814_v60, %v1814_v60  ;;  %v1855_v22 = vadd.f32 %v969_v56, %v953_v17  ;;  %v1857_v24 = vadd.f32 %v970_v12, %v954_v20 }
 0x244   : > { %v1829_v6 = vadd.f32 %v960_v63, %v944_v1  ;;  %v1843_v14 = vadd.f32 %v968_v7, %v952_v11  ;;  %v991_v19 = vmul.f32 %v1825_v2, %v1825_v2  ;;  %v999_v26 = vmul.f32 %v1841_v13, %v1841_v13 }
 0x245   : > { %1025 = vadd.xlane.f32.xlu1 %v998_v52  ;;  %1019 = vadd.xlane.f32.xlu0 %v995_v48  ;;  %v994_v8 = vmul.f32 %v1819_v62, %v1819_v62  ;;  %v1002_v27 = vmul.f32 %v1857_v24, %v1857_v24  ;;  %v1001_v28 = vmul.f32 %v1855_v22, %v1855_v22 }
 0x246   : > { %v992_v18 = vmul.f32 %v1829_v6, %v1829_v6  ;;  %v1000_v25 = vmul.f32 %v1843_v14, %v1843_v14 }
 0x249   : > { %1021 = vadd.xlane.f32.xlu1 %v996_v58  ;;  %1005 = vadd.xlane.f32.xlu0 %v988_v59 }
 0x24d   : > { %1017 = vadd.xlane.f32.xlu1 %v994_v8  ;;  %1015 = vadd.xlane.f32.xlu0 %v993_v9 }
 0x251   : > { %1013 = vadd.xlane.f32.xlu1 %v992_v18  ;;  %1011 = vadd.xlane.f32.xlu0 %v991_v19 }
 0x255   : > { %1029 = vadd.xlane.f32.xlu1 %v1000_v25  ;;  %1027 = vadd.xlane.f32.xlu0 %v999_v26 }
 0x259   : > { %1033 = vadd.xlane.f32.xlu1 %v1002_v27  ;;  %1031 = vadd.xlane.f32.xlu0 %v1001_v28 }
 0x2ca   : > { %v1024_v29 = vpop.xlane.xlu0 %1023  ;;  %v1008_v30 = vpop.xlane.xlu1 %1007 }
 0x2cb   : > { %v1045_v33 = vmax.f32 %v1024_v29, 1e-24  ;;  %v1037_v34 = vmax.f32 %v1008_v30, 1e-24 }
 0x2cd   : > { %1453 = vrsqrt.f32 %v1045_v33 }
 0x2ce   : > { %1455 = vrsqrt.f32 %v1037_v34  ;;  %v1010_v35 = vpop.xlane.xlu1 %1009  ;;  %v1004_v36 = vpop.xlane.xlu0 %1003 }
 0x2cf   : > { %v1038_v37 = vmax.f32 %v1010_v35, 1e-24  ;;  %v1035_v38 = vmax.f32 %v1004_v36, 1e-24 }
 0x2d1   : > { %1457 = vrsqrt.f32 %v1038_v37 }
 0x2d2   : > { %1459 = vrsqrt.f32 %v1035_v38  ;;  %v1026_v39 = vpop.xlane.xlu1 %1025  ;;  %v1020_v40 = vpop.xlane.xlu0 %1019 }
 0x2d3   : > { %v1046_v41 = vmax.f32 %v1026_v39, 1e-24  ;;  %v1043_v42 = vmax.f32 %v1020_v40, 1e-24 }
 0x2d5   : > { %1461 = vrsqrt.f32 %v1046_v41 }
 0x2d6   : > { %1463 = vrsqrt.f32 %v1043_v42  ;;  %v1022_v43 = vpop.xlane.xlu1 %1021  ;;  %v1006_v44 = vpop.xlane.xlu0 %1005 }
 0x2d7   : > { %v1454_v47 = vpop.eup %1453  ;;  %v1044_v48 = vmax.f32 %v1022_v43, 1e-24  ;;  %v1036_v49 = vmax.f32 %v1006_v44, 1e-24 }
 0x2d8   : > { %v1456_v50 = vpop.eup %1455  ;;  %v1077_v51 = vmul.f32 %v1454_v47, %v1757_v15 }
 0x2d9   : > { %v1069_v52 = vmul.f32 %v1456_v50, %v1759_v16  ;;  %1465 = vrsqrt.f32 %v1044_v48 }
 0x2da   : > { %1093 = vst [vmem:[%s1947_s9 + $0x50] sm:$0xff] %v1077_v51  ;;  %1467 = vrsqrt.f32 %v1036_v49  ;;  %v1018_v53 = vpop.xlane.xlu1 %1017  ;;  %v1016_v54 = vpop.xlane.xlu0 %1015 }
 0x2db   : > { %v1458_v55 = vpop.eup %1457  ;;  %1085 = vst [vmem:[%s1947_s9 + $0x10] sm:$0xff] %v1069_v52  ;;  %v1042_v57 = vmax.f32 %v1018_v53, 1e-24  ;;  %v1041_v58 = vmax.f32 %v1016_v54, 1e-24 }
 0x2dc   : > { %v1460_v59 = vpop.eup %1459  ;;  %v1070_v15 = vmul.f32 %v1458_v55, %v1768_v23 }
 0x2dd   : > { %v1067_v16 = vmul.f32 %v1460_v59, %v1763_v21  ;;  %1469 = vrsqrt.f32 %v1042_v57 }
 0x2de   : > { %1086 = vst [vmem:[%s1947_s9 + $0x18] sm:$0xff] %v1070_v15  ;;  %1471 = vrsqrt.f32 %v1041_v58  ;;  %v1014_v61 = vpop.xlane.xlu1 %1013  ;;  %v1012_v63 = vpop.xlane.xlu0 %1011 }
 0x2df   : > { %v1462_v0 = vpop.eup %1461  ;;  %1083 = vst [vmem:[%s1947_s9] sm:$0xff] %v1067_v16  ;;  %v1040_v1 = vmax.f32 %v1014_v61, 1e-24  ;;  %v1039_v3 = vmax.f32 %v1012_v63, 1e-24 }
 0x2e0   : > { %v1464_v4 = vpop.eup %1463  ;;  %v1078_v23 = vmul.f32 %v1462_v0, %v1779_v32 }
 0x2e1   : > { %v1075_v21 = vmul.f32 %v1464_v4, %v1777_v31  ;;  %1473 = vrsqrt.f32 %v1040_v1 }
 0x2e2   : > { %1094 = vst [vmem:[%s1947_s9 + $0x58] sm:$0xff] %v1078_v23  ;;  %1475 = vrsqrt.f32 %v1039_v3  ;;  %v1030_v5 = vpop.xlane.xlu1 %1029  ;;  %v1028_v7 = vpop.xlane.xlu0 %1027 }
 0x2e3   : > { %v1466_v8 = vpop.eup %1465  ;;  %1091 = vst [vmem:[%s1947_s9 + $0x40] sm:$0xff] %v1075_v21  ;;  %v1048_v9 = vmax.f32 %v1030_v5, 1e-24  ;;  %v1047_v10 = vmax.f32 %v1028_v7, 1e-24 }
 0x2e4   : > { %v1468_v11 = vpop.eup %1467  ;;  %v1076_v32 = vmul.f32 %v1466_v8, %v1795_v46 }
 0x2e5   : > { %v1068_v31 = vmul.f32 %v1468_v11, %v1793_v45  ;;  %1477 = vrsqrt.f32 %v1048_v9 }
 0x2e6   : > { %1092 = vst [vmem:[%s1947_s9 + $0x48] sm:$0xff] %v1076_v32  ;;  %1479 = vrsqrt.f32 %v1047_v10  ;;  %v1034_v56 = vpop.xlane.xlu1 %1033  ;;  %v1032_v12 = vpop.xlane.xlu0 %1031 }
 0x2e7   : > { %v1470_v18 = vpop.eup %1469  ;;  %1084 = vst [vmem:[%s1947_s9 + $0x8] sm:$0xff] %v1068_v31  ;;  %v1050_v19 = vmax.f32 %v1034_v56, 1e-24  ;;  %v1049_v17 = vmax.f32 %v1032_v12, 1e-24 }
 0x2e8   : > { %v1472_v20 = vpop.eup %1471  ;;  %v1074_v46 = vmul.f32 %v1470_v18, %v1819_v62 }
 0x2e9   : > { %v1073_v45 = vmul.f32 %v1472_v20, %v1814_v60  ;;  %1481 = vrsqrt.f32 %v1050_v19 }
 0x2ea   : > { %1090 = vst [vmem:[%s1947_s9 + $0x38] sm:$0xff] %v1074_v46  ;;  %1483 = vrsqrt.f32 %v1049_v17 }
 0x2eb   : > { %v1474_v25 = vpop.eup %1473  ;;  %1089 = vst [vmem:[%s1947_s9 + $0x30] sm:$0xff] %v1073_v45 }
 0x2ec   : > { %v1476_v26 = vpop.eup %1475  ;;  %v1072_v27 = vmul.f32 %v1474_v25, %v1829_v6 }
 0x2ed   : > { %v1071_v28 = vmul.f32 %v1476_v26, %v1825_v2 }
 0x2ee   : > { %1088 = vst [vmem:[%s1947_s9 + $0x28] sm:$0xff] %v1072_v27 }
 0x2ef   : > { %v1478_v60 = vpop.eup %1477  ;;  %1087 = vst [vmem:[%s1947_s9 + $0x20] sm:$0xff] %v1071_v28 }
 0x2f0   : > { %v1480_v62 = vpop.eup %1479  ;;  %v1080_v29 = vmul.f32 %v1478_v60, %v1843_v14 }
 0x2f1   : > { %v1079_v30 = vmul.f32 %v1480_v62, %v1841_v13 }
 0x2f2   : > { %1096 = vst [vmem:[%s1947_s9 + $0x68] sm:$0xff] %v1080_v29 }
 0x2f3   : > { %v1482_v6 = vpop.eup %1481  ;;  %1095 = vst [vmem:[%s1947_s9 + $0x60] sm:$0xff] %v1079_v30 }
 0x2f4   : > { %v1484_v2 = vpop.eup %1483  ;;  %v1082_v33 = vmul.f32 %v1482_v6, %v1857_v24 }
 0x2f5   : > { %v1081_v34 = vmul.f32 %v1484_v2, %v1855_v22 }
 0x2f6   : > { %1098 = vst [vmem:[%s1947_s9 + $0x78] sm:$0xff] %v1082_v33 }
 0x2f7   : > { %1097 = vst [vmem:[%s1947_s9 + $0x70] sm:$0xff] %v1081_v34 }
 0x2f8 PF: > { %s31_s21 = sadd.s32 1, %s1552_s21   ;;  %s1952_s19 = smov %s1548_s20 }
 0x2f9   : > { %p28_p0 = scmp.ge.s32.totalorder %s31_s21, 4   ;;  %s1953_s20 = smov %s1955_s22 }
 0x2fb   :  { %30 = sbr.rel (!%p28_p0) target bundleno = 27 (0x1b), region = 97 }
 0x302   :  { %1121 = vsyncpa [#allocation8], 1 }
 0x303   :  { %1123 = vsyncpa [#allocation8 + $0x1], 1 }

// kernel: drew_share_gnn_forward.5
= control target key start
LH: loop header
LB: loop body
LE: loop exit
PB: predicated region body
PF: predicated region fallthrough
CT: control target
= control target key end

     0   :  { %s1940_s0 = inlined_call_operand.vmem [shape: s32[3], index: 0, kind: input, shape index: {}]   ;;  %s1941_s2 = inlined_call_operand.vmem [shape: f32[3], index: 2, kind: input, shape index: {}]   ;;  %s1942_s4 = inlined_call_operand.vmem [shape: bf16[3,128,128], index: 4, kind: input, shape index: {}]   ;;  %s1943_s5 = inlined_call_operand.vmem [shape: bf16[3,128,128], index: 5, kind: input, shape index: {}]   ;;  %s1944_s6 = inlined_call_operand.vmem [shape: bf16[128,128], index: 6, kind: input, shape index: {}]   ;;  %s1945_s7 = inlined_call_operand.vmem [shape: f32[1,128], index: 7, kind: input, shape index: {}]   ;;  %s1946_s8 = inlined_call_operand.vmem [shape: f32[128,128], index: 8, kind: input, shape index: {}]   ;;  %s1947_s9 = inlined_call_operand.vmem [shape: f32[128,128], index: 9, kind: output, shape index: {}]   ;;  %s1948_s1 = inlined_call_operand.vmem [shape: s32[3], index: 1, kind: input, shape index: {}]   ;;  %s1949_s3 = inlined_call_operand.<no memory space> [shape: f32[1], index: 3, kind: input, shape index: {}]  }
   0x1   :  { %s14_s11 = sshll.u32 %s1940_s0, 4  ;;  %s18_s14 = sshll.u32 %s1948_s1, 4  ;;  %s15_s11 = int_to_ptr.vmem [resolvable:$true] %s14_s11  ;;  %s19_s14 = int_to_ptr.vmem [resolvable:$true] %s18_s14 }
   0x2   :  { %s1485_s15 = scalar_lea.vmem %s15_s11, 16  ;;  %p1490_p1 = scmp.lt.s32.totalorder %s15_s11, %s15_s11 }
   0x3   :  { %p1486_p0 = scmp.ne.s32.totalorder %s15_s11, %s1485_s15  ;;  %p1491_p2 = scmp.lt.s32.totalorder %s1485_s15, %s1485_s15 }
   0x5   :  { %p1492_p3 = por %p1491_p2, %p1490_p1 }
   0x7   :  { %p1493_p4 = pnand %p1492_p3, %p1486_p0 }
   0x9   :  { %1496 = shalt.err (!%p1493_p4)  }
   0xa   :  { %s1554_s16 = smov [#allocation4]   ;;  %s1497_s17 = scalar_lea.vmem %s19_s14, 16 }
   0xb   :  { %17 = dma.vmem_to_smem %s15_s11, 16, %s1554_s16, [#allocation3] }
   0xc   :  { %p1498_p5 = scmp.ne.s32.totalorder %s19_s14, %s1497_s17  ;;  %p1502_p6 = scmp.lt.s32.totalorder %s19_s14, %s19_s14 }
   0xd   :  { %p1503_p7 = scmp.lt.s32.totalorder %s1497_s17, %s1497_s17 }
   0xf   :  { %p1504_p8 = por %p1503_p7, %p1502_p6 }
  0x11   :  { %p1505_p9 = pnand %p1504_p8, %p1498_p5 }
  0x13   :  { %1508 = shalt.err (!%p1505_p9)  }
  0x14   :  { %s1555_s0 = smov [#allocation5]   ;;  %22 = sst [smem:[#allocation6]] %s1949_s3 }
  0x15   :  { %21 = dma.vmem_to_smem %s19_s14, 16, %s1555_s0, [#allocation3] }
  0x16   :  { %1536 = dma.done.wait [#allocation3], 32 }
  0x17   :  { %1537 = vsyncadd [#allocation3], 4294967264 }
  0x18   :  { %24 = sfence }
  0x19   :  { %25 = vsyncpa [#allocation8], 0  ;;  %s1617_s19 = smov 0   ;;  %s1619_s20 = smov 0  }
  0x1a   :  { %s1621_s21 = smov 0  }
  0x1b LB: > { %s1218_s3 = sadd.s32 4294967295, %s1552_s21   ;;  %s46_s22 = sadd.s32 1, %s1548_s20  ;;  %s1552_s21 = sphi %s1621_s21, %s31_s21   ;;  %s1548_s20 = sphi %s1619_s20, %s1953_s20   ;;  %s1544_s19 = sphi %s1617_s19, %s1952_s19  }
  0x1c   : > { %p48_p10 = scmp.ge.s32.totalorder %s46_s22, 3  ;;  %p1219_p11 = scmp.ge.s32.totalorder %s1552_s21, 1 }
  0x1d   : > { %p253_p12 = scmp.lt.s32.totalorder %s1552_s21, 4  ;;  %p1642_p0 = scmp.eq.s32.totalorder %s1218_s3, 0 }
  0x1e   : > { %s1955_s22 = smov (%p48_p10, %s46_s22), 0  ;;  %s266_s27 = sshll.u32 %s1941_s2, 4  ;;  %s267_s27 = int_to_ptr.vmem [resolvable:$true] %s266_s27 }
  0x1f   : > { %p1638_p13 = pnand %p1219_p11, %p253_p12  ;;  %s1509_s28 = scalar_lea.vmem %s267_s27, 16 }
  0x20   : > { %p1510_p3 = scmp.ne.s32.totalorder %s267_s27, %s1509_s28  ;;  %p1517_p7 = scmp.lt.s32.totalorder %s267_s27, %s267_s27 }
  0x21   : > { %p1395_p1 = pneg %p1638_p13  ;;  %p1518_p8 = scmp.lt.s32.totalorder %s1509_s28, %s1509_s28 }
  0x23   : > { %p1396_p2 = pnand %p1642_p0, %p1395_p1  ;;  %p1519_p9 = por %p1518_p8, %p1517_p7 }
  0x25   : > { %p1511_p4 = pneg %p1396_p2 }
  0x27   : > { %p1512_p5 = pnand %p1511_p4, %p1510_p3 }
  0x29   : > { %p1513_p6 = pneg %p1512_p5 }
  0x2b   : > { %p1520_p10 = pnand %p1519_p9, %p1513_p6 }
  0x2d   : > { %1523 = shalt.err (!%p1520_p10)
}
  0x2e   : > { %s1556_s29 = smov [#allocation7]   ;;  %330 = sbr.rel (%p1638_p13) target bundleno = 760 (0x2f8), region = 48 }
  0x2f   : > { %1398 = dma.vmem_to_smem (!%p1396_p2), %s267_s27, 16, %s1556_s29, [#allocation8]  }
  0x35   : > { %1539 = dma.done.wait (%p1642_p0), [#allocation8], 16  }
  0x36   : > { %1541 = vsyncadd (%p1642_p0), [#allocation8], 4294967280 }
  0x37   : > { %336 = sfence }
  0x38   : > { %s386_s30 = sld [smem:[#allocation4 + %s1544_s19]]  ;;  %p426_p11 = scmp.eq.s32.totalorder %s1544_s19, 0 }
  0x39   : > { %s401_s10 = sld [smem:[#allocation5 + %s1544_s19]]  ;;  %v1557_v0 = vmov (%p426_p11), 0.0  }
  0x3a   : > { %432 = vst [vmem:[#allocation2] sm:$0xff] (%p426_p11), %v1557_v0  ;;  %433 = vst [vmem:[#allocation2 + $0x8] sm:$0xff] (%p426_p11), %v1557_v0 }
  0x3b   : > { %434 = vst [vmem:[#allocation2 + $0x10] sm:$0xff] (%p426_p11), %v1557_v0  ;;  %435 = vst [vmem:[#allocation2 + $0x18] sm:$0xff] (%p426_p11), %v1557_v0 }
  0x3c   : > { %436 = vst [vmem:[#allocation2 + $0x20] sm:$0xff] (%p426_p11), %v1557_v0  ;;  %437 = vst [vmem:[#allocation2 + $0x28] sm:$0xff] (%p426_p11), %v1557_v0 }
  0x3d   : > { %431 = sbr.rel (!%p426_p11) target bundleno = 68 (0x44), region = 56  ;;  %438 = vst [vmem:[#allocation2 + $0x30] sm:$0xff] (%p426_p11), %v1557_v0  ;;  %439 = vst [vmem:[#allocation2 + $0x38] sm:$0xff] (%p426_p11), %v1557_v0 }
  0x3e   : > { %p388_p12 = scmp.lt.s32.totalorder %s386_s30, 2  ;;  %440 = vst [vmem:[#allocation2 + $0x40] sm:$0xff] (%p426_p11), %v1557_v0  ;;  %441 = vst [vmem:[#allocation2 + $0x48] sm:$0xff] (%p426_p11), %v1557_v0 }
  0x3f   : > { %p403_p1 = scmp.lt.s32.totalorder %s401_s10, 2  ;;  %442 = vst [vmem:[#allocation2 + $0x50] sm:$0xff] (%p426_p11), %v1557_v0  ;;  %443 = vst [vmem:[#allocation2 + $0x58] sm:$0xff] (%p426_p11), %v1557_v0 }
  0x40   : > { %s1957_s30 = smov (!%p388_p12, %s386_s30), 2  ;;  %444 = vst [vmem:[#allocation2 + $0x60] sm:$0xff] (%p426_p11), %v1557_v0  ;;  %445 = vst [vmem:[#allocation2 + $0x68] sm:$0xff] (%p426_p11), %v1557_v0 }
  0x41   : > { %s1959_s10 = smov (!%p403_p1, %s401_s10), 2  ;;  %s1259_s11 = sshll.u32 %s1957_s30, 6  ;;  %446 = vst [vmem:[#allocation2 + $0x70] sm:$0xff] (%p426_p11), %v1557_v0  ;;  %447 = vst [vmem:[#allocation2 + $0x78] sm:$0xff] (%p426_p11), %v1557_v0 }
  0x42   : > { %s1665_s14 = scalar_lea.vmem %s1942_s4, %s1259_s11  ;;  %s1260_s15 = sshll.u32 %s1959_s10, 6 }
  0x43   : > { %s1670_s0 = scalar_lea.vmem %s1943_s5, %s1260_s15 }
  0x44 PF: > { %v1429_v1 = vld [vmem:[%s1670_s0] sm:$0xff]   ;;  %v1430_v2 = vld [vmem:[%s1670_s0 + $0x8] sm:$0xff]   ;;  %v1431_v3 = vld [vmem:[%s1670_s0 + $0x10] sm:$0xff]   ;;  %p739_p13 = scmp.eq.s32.totalorder %s1544_s19, 2  ;;  %s689_s1 = sld [smem:[#allocation7 + %s1544_s19]] }
  0x45   : > { %1295 = vmatprep.subr.bf16.mxu0 %v1429_v1  ;;  %1359 = vmatprep.subr.bf16.mxu1 %v1429_v1  ;;  %v1432_v4 = vld [vmem:[%s1670_s0 + $0x18] sm:$0xff]   ;;  %v1437_v5 = vld [vmem:[%s1665_s14] sm:$0xff]   ;;  %v1434_v8 = vld [vmem:[%s1670_s0 + $0x28] sm:$0xff]   ;;  %s784_s15 = sld [smem:[#allocation6]] (%p739_p13) }
  0x46   : > { %1296 = vmatpush3.bf16.msra.mxu0 %v1429_v1  ;;  %1367 = vmatpush3.bf16.msra.mxu1 %v1429_v1  ;;  %v1438_v6 = vld [vmem:[%s1665_s14 + $0x20] sm:$0xff]   ;;  %v1435_v9 = vld [vmem:[%s1670_s0 + $0x30] sm:$0xff]   ;;  %v1436_v10 = vld [vmem:[%s1670_s0 + $0x38] sm:$0xff]  }
  0x47   : > { %1297 = vmatprep.subr.bf16.mxu0 %v1430_v2  ;;  %1360 = vmatprep.subr.bf16.mxu1 %v1430_v2  ;;  %v1433_v7 = vld [vmem:[%s1670_s0 + $0x20] sm:$0xff]   ;;  %v1439_v11 = vld [vmem:[%s1665_s14 + $0x8] sm:$0xff]   ;;  %v1441_v13 = vld [vmem:[%s1665_s14 + $0x10] sm:$0xff]  }
  0x48   : > { %1311 = vmatprep.mubr.bf16.mxu0 %v1437_v5  ;;  %1319 = vmatprep.mubr.bf16.mxu1 %v1438_v6  ;;  %v1440_v12 = vld [vmem:[%s1665_s14 + $0x28] sm:$0xff]   ;;  %v1442_v14 = vld [vmem:[%s1665_s14 + $0x30] sm:$0xff]   ;;  %v1443_v15 = vld [vmem:[%s1665_s14 + $0x18] sm:$0xff]  }
  0x49   : > { %v1444_v16 = vld [vmem:[%s1665_s14 + $0x38] sm:$0xff]   ;;  %v675_v19 = vld [vmem:[#allocation2 + $0x10] sm:$0xff]  ;;  %v673_v25 = vld [vmem:[#allocation2] sm:$0xff] }
  0x4a   : > { %1298 = vmatpush3.bf16.msra.mxu0 %v1430_v2  ;;  %1368 = vmatpush3.bf16.msra.mxu1 %v1430_v2  ;;  %v1690_v17 = vstv %s689_s1  ;;  %v683_v21 = vld [vmem:[#allocation2 + $0x50] sm:$0xff]  ;;  %v681_v27 = vld [vmem:[#allocation2 + $0x40] sm:$0xff]  ;;  %v676_v31 = vld [vmem:[#allocation2 + $0x18] sm:$0xff] }
  0x4b   : > { %1299 = vmatprep.subr.bf16.mxu0 %v1431_v3  ;;  %1361 = vmatprep.subr.bf16.mxu1 %v1431_v3  ;;  %v684_v33 = vld [vmem:[#allocation2 + $0x58] sm:$0xff]  ;;  %v674_v39 = vld [vmem:[#allocation2 + $0x8] sm:$0xff]  ;;  %v679_v51 = vld [vmem:[#allocation2 + $0x30] sm:$0xff] }
  0x4c   : > { %v682_v41 = vld [vmem:[#allocation2 + $0x48] sm:$0xff]  ;;  %v687_v53 = vld [vmem:[#allocation2 + $0x70] sm:$0xff]  ;;  %v677_v57 = vld [vmem:[#allocation2 + $0x20] sm:$0xff] }
  0x4d   : > { %v685_v59 = vld [vmem:[#allocation2 + $0x60] sm:$0xff]  ;;  %v680_v63 = vld [vmem:[#allocation2 + $0x38] sm:$0xff] }
  0x4e   : > { %1300 = vmatpush3.bf16.msra.mxu0 %v1431_v3  ;;  %1369 = vmatpush3.bf16.msra.mxu1 %v1431_v3  ;;  %v688_v1 = vld [vmem:[#allocation2 + $0x78] sm:$0xff] }
  0x4f   : > { %1301 = vmatprep.subr.bf16.mxu0 %v1432_v4  ;;  %1362 = vmatprep.subr.bf16.mxu1 %v1432_v4 }
  0x52   : > { %1302 = vmatpush3.bf16.msra.mxu0 %v1432_v4  ;;  %1370 = vmatpush3.bf16.msra.mxu1 %v1432_v4 }
  0x53   : > { %1303 = vmatprep.subr.bf16.mxu0 %v1433_v7  ;;  %1363 = vmatprep.subr.bf16.mxu1 %v1433_v7 }
  0x56   : > { %1304 = vmatpush3.bf16.msra.mxu0 %v1433_v7  ;;  %1371 = vmatpush3.bf16.msra.mxu1 %v1433_v7  ;;  %v678_v7 = vld [vmem:[#allocation2 + $0x28] sm:$0xff] }
  0x57   : > { %1305 = vmatprep.subr.bf16.mxu0 %v1434_v8  ;;  %1364 = vmatprep.subr.bf16.mxu1 %v1434_v8 }
  0x5a   : > { %1306 = vmatpush3.bf16.msra.mxu0 %v1434_v8  ;;  %1372 = vmatpush3.bf16.msra.mxu1 %v1434_v8 }
  0x5b   : > { %1307 = vmatprep.subr.bf16.mxu0 %v1435_v9  ;;  %1365 = vmatprep.subr.bf16.mxu1 %v1435_v9 }
  0x5e   : > { %1308 = vmatpush3.bf16.msra.mxu0 %v1435_v9  ;;  %1373 = vmatpush3.bf16.msra.mxu1 %v1435_v9  ;;  %v686_v9 = vld [vmem:[#allocation2 + $0x68] sm:$0xff] }
  0x5f   : > { %1309 = vmatprep.subr.bf16.mxu0 %v1436_v10  ;;  %1366 = vmatprep.subr.bf16.mxu1 %v1436_v10 }
  0x62   : > { %1310 = vmatpush3.bf16.msra.mxu0 %v1436_v10  ;;  %1374 = vmatpush3.bf16.msra.mxu1 %v1436_v10 }
  0x65   : > { %1312 = vmatmul.mubr.bf16.vlgmr.msra.gmra.mrb[0].mxu0 %v1439_v11  ;;  %1320 = vmatmul.mubr.bf16.vlgmr.msra.gmra.mrb[0].mxu1 %v1440_v12 }
  0x66   : > { %1315 = vmatprep.mubr.bf16.mxu0 %v1441_v13  ;;  %1323 = vmatprep.mubr.bf16.mxu1 %v1442_v14 }
  0x6d   : > { %1316 = vmatmul.mubr.bf16.gmra.mrb[4].mxu0 %v1443_v15  ;;  %1324 = vmatmul.mubr.bf16.gmra.mrb[4].mxu1 %v1444_v16 }
 0x138   : > { %v1313_v18 = vpop.f32.mrb[0].mxu0  ;;  %v1321_v20 = vpop.f32.mrb[0].mxu1 }
 0x139   : > { %v693_v22 = vmul.f32 %v1313_v18, %v1690_v17  ;;  %v701_v23 = vmul.f32 %v1321_v20, %v1690_v17  ;;  %v610_v24 = vpop.f32.mrb[1].mxu0  ;;  %v642_v26 = vpop.f32.mrb[1].mxu1  ;;  %v1447_v20 = vld [vmem:[%s1944_s6 + $0x10] sm:$0xff] (%p739_p13)  }
 0x13a   : > { %v691_v28 = vmul.f32 %v1690_v17, %v610_v24  ;;  %v699_v29 = vmul.f32 %v1690_v17, %v642_v26  ;;  %v1314_v30 = vpop.f32.mrb[2].mxu0  ;;  %v1322_v32 = vpop.f32.mrb[2].mxu1 }
 0x13b   : > { %v709_v34 = vadd.f32 %v693_v22, %v675_v19  ;;  %v717_v35 = vadd.f32 %v701_v23, %v683_v21  ;;  %v694_v36 = vmul.f32 %v1314_v30, %v1690_v17  ;;  %v702_v37 = vmul.f32 %v1322_v32, %v1690_v17  ;;  %v613_v38 = vpop.f32.mrb[3].mxu0  ;;  %v645_v40 = vpop.f32.mrb[3].mxu1  ;;  %v1445_v19 = vld [vmem:[%s1944_s6] sm:$0xff] (%p739_p13)   ;;  %v1448_v21 = vld [vmem:[%s1944_s6 + $0x18] sm:$0xff] (%p739_p13)   ;;  %v1451_v30 = vld [vmem:[%s1944_s6 + $0x30] sm:$0xff] (%p739_p13)  }
 0x13c   : > { %v707_v42 = vadd.f32 %v691_v28, %v673_v25  ;;  %v715_v43 = vadd.f32 %v699_v29, %v681_v27  ;;  %v692_v44 = vmul.f32 %v1690_v17, %v613_v38  ;;  %v700_v45 = vmul.f32 %v1690_v17, %v645_v40  ;;  %1327 = vmatprep.subr.bf16.mxu0 (%p739_p13), %v1445_v19  ;;  %v1449_v28 = vld [vmem:[%s1944_s6 + $0x20] sm:$0xff] (%p739_p13)   ;;  %v1450_v29 = vld [vmem:[%s1944_s6 + $0x28] sm:$0xff] (%p739_p13)  }
 0x13d   : > { %725 = vst [vmem:[#allocation2 + $0x10] sm:$0xff] %v709_v34  ;;  %733 = vst [vmem:[#allocation2 + $0x50] sm:$0xff] %v717_v35  ;;  %v710_v46 = vadd.f32 %v694_v36, %v676_v31  ;;  %v718_v47 = vadd.f32 %v702_v37, %v684_v33  ;;  %1375 = vmatprep.subr.bf16.mxu1 (%p739_p13), %v1445_v19  ;;  %1328 = vmatpush3.bf16.msra.mxu0 (%p739_p13), %v1445_v19  ;;  %v1452_v31 = vld [vmem:[%s1944_s6 + $0x38] sm:$0xff] (%p739_p13)  }
 0x13e   : > { %723 = vst [vmem:[#allocation2] sm:$0xff] %v707_v42  ;;  %731 = vst [vmem:[#allocation2 + $0x40] sm:$0xff] %v715_v43  ;;  %v708_v48 = vadd.f32 %v692_v44, %v674_v39  ;;  %v716_v49 = vadd.f32 %v700_v45, %v682_v41  ;;  %1383 = vmatpush3.bf16.msra.mxu1 (%p739_p13), %v1445_v19 }
 0x13f   : > { %726 = vst [vmem:[#allocation2 + $0x18] sm:$0xff] %v710_v46  ;;  %734 = vst [vmem:[#allocation2 + $0x58] sm:$0xff] %v718_v47 }
 0x140   : > { %724 = vst [vmem:[#allocation2 + $0x8] sm:$0xff] %v708_v48  ;;  %732 = vst [vmem:[#allocation2 + $0x48] sm:$0xff] %v716_v49  ;;  %v1317_v50 = vpop.f32.mrb[4].mxu0  ;;  %v1325_v52 = vpop.f32.mrb[4].mxu1 }
 0x141   : > { %v697_v54 = vmul.f32 %v1317_v50, %v1690_v17  ;;  %v705_v55 = vmul.f32 %v1325_v52, %v1690_v17  ;;  %v626_v56 = vpop.f32.mrb[5].mxu0  ;;  %v658_v58 = vpop.f32.mrb[5].mxu1  ;;  %v789_v50 = vlaneseq (%p739_p13)  ;;  %v785_v52 = vld [vmem:[%s1945_s7] sm:$0x1] (%p739_p13) }
 0x142   : > { %v695_v60 = vmul.f32 %v1690_v17, %v626_v56  ;;  %v703_v61 = vmul.f32 %v1690_v17, %v658_v58  ;;  %v1318_v62 = vpop.f32.mrb[6].mxu0  ;;  %v1326_v0 = vpop.f32.mrb[6].mxu1  ;;  %743 = sbr.rel (!%p739_p13) target bundleno = 760 (0x2f8), region = 60 }
 0x143   : > { %v713_v2 = vadd.f32 %v697_v54, %v679_v51  ;;  %v721_v3 = vadd.f32 %v705_v55, %v687_v53  ;;  %v698_v4 = vmul.f32 %v1318_v62, %v1690_v17  ;;  %v706_v5 = vmul.f32 %v1326_v0, %v1690_v17  ;;  %v629_v6 = vpop.f32.mrb[7].mxu0  ;;  %v661_v8 = vpop.f32.mrb[7].mxu1 }
 0x144   : > { %v711_v10 = vadd.f32 %v695_v60, %v677_v57  ;;  %v719_v11 = vadd.f32 %v703_v61, %v685_v59  ;;  %v696_v12 = vmul.f32 %v1690_v17, %v629_v6  ;;  %v704_v13 = vmul.f32 %v1690_v17, %v661_v8  ;;  %v1446_v17 = vld [vmem:[%s1944_s6 + $0x8] sm:$0xff] (%p739_p13)   ;;  %v746_v32 = vld [vmem:[#allocation2 + $0x10] sm:$0xff] (%p739_p13) }
 0x145   : > { %729 = vst [vmem:[#allocation2 + $0x30] sm:$0xff] %v713_v2  ;;  %737 = vst [vmem:[#allocation2 + $0x70] sm:$0xff] %v721_v3  ;;  %v714_v14 = vadd.f32 %v698_v4, %v680_v63  ;;  %v722_v15 = vadd.f32 %v706_v5, %v688_v1  ;;  %1329 = vmatprep.subr.bf16.mxu0 (%p739_p13), %v1446_v17  ;;  %1376 = vmatprep.subr.bf16.mxu1 (%p739_p13), %v1446_v17  ;;  %v744_v22 = vld [vmem:[#allocation2] sm:$0xff] (%p739_p13)  ;;  %v754_v34 = vld [vmem:[#allocation2 + $0x50] sm:$0xff] (%p739_p13)  ;;  %v790_v51 = vshrl.u32 (%p739_p13), %v789_v50, 7 }
 0x146   : > { %727 = vst [vmem:[#allocation2 + $0x20] sm:$0xff] %v711_v10  ;;  %735 = vst [vmem:[#allocation2 + $0x60] sm:$0xff] %v719_v11  ;;  %v712_v16 = vadd.f32 %v696_v12, %v678_v7  ;;  %v720_v18 = vadd.f32 %v704_v13, %v686_v9  ;;  %1330 = vmatpush3.bf16.msra.mxu0 (%p739_p13), %v1446_v17  ;;  %1384 = vmatpush3.bf16.msra.mxu1 (%p739_p13), %v1446_v17  ;;  %v752_v24 = vld [vmem:[#allocation2 + $0x40] sm:$0xff] (%p739_p13)  ;;  %v747_v33 = vld [vmem:[#allocation2 + $0x18] sm:$0xff] (%p739_p13)  ;;  %v786_v53 = vstv (%p739_p13), %s784_s15 }
 0x147   : > { %730 = vst [vmem:[#allocation2 + $0x38] sm:$0xff] %v714_v14  ;;  %738 = vst [vmem:[#allocation2 + $0x78] sm:$0xff] %v722_v15  ;;  %1331 = vmatprep.subr.bf16.mxu0 (%p739_p13), %v1447_v20  ;;  %1377 = vmatprep.subr.bf16.mxu1 (%p739_p13), %v1447_v20  ;;  %v745_v23 = vld [vmem:[#allocation2 + $0x8] sm:$0xff] (%p739_p13)  ;;  %v755_v35 = vld [vmem:[#allocation2 + $0x58] sm:$0xff] (%p739_p13)  ;;  %v761_v40 = vpack.c.bf16 (%p739_p13), %v747_v33, %v746_v32  ;;  %v787_v54 = vmul.f32 (%p739_p13), %v786_v53, %v785_v52  ;;  %v791_v55 = vsub.s32 (%p739_p13), 0, %v790_v51 }
 0x148   : > { %728 = vst [vmem:[#allocation2 + $0x28] sm:$0xff] %v712_v16  ;;  %736 = vst [vmem:[#allocation2 + $0x68] sm:$0xff] %v720_v18  ;;  %v760_v25 = vpack.c.bf16 (%p739_p13), %v745_v23, %v744_v22  ;;  %v753_v26 = vld [vmem:[#allocation2 + $0x48] sm:$0xff] (%p739_p13)  ;;  %v765_v41 = vpack.c.bf16 (%p739_p13), %v755_v35, %v754_v34  ;;  %v949_v3 = vld [vmem:[%s1946_s8 + $0x50] sm:$0xff] (%p739_p13) }
 0x149   : > { %v764_v27 = vpack.c.bf16 %v753_v26, %v752_v24  ;;  %v1737_v56 = vrot.slane %v787_v54, %v791_v55  ;;  %v941_v4 = vld [vmem:[%s1946_s8 + $0x10] sm:$0xff]  ;;  %v939_v11 = vld [vmem:[%s1946_s8] sm:$0xff]  ;;  %v942_v13 = vld [vmem:[%s1946_s8 + $0x18] sm:$0xff] }
 0x14a   : > { %1332 = vmatpush3.bf16.msra.mxu0 %v1447_v20  ;;  %1385 = vmatpush3.bf16.msra.mxu1 %v1447_v20  ;;  %v947_v22 = vld [vmem:[%s1946_s8 + $0x40] sm:$0xff]  ;;  %v950_v24 = vld [vmem:[%s1946_s8 + $0x58] sm:$0xff]  ;;  %v945_v53 = vld [vmem:[%s1946_s8 + $0x30] sm:$0xff] }
 0x14b   : > { %1333 = vmatprep.subr.bf16.mxu0 %v1448_v21  ;;  %1378 = vmatprep.subr.bf16.mxu1 %v1448_v21  ;;  %v946_v54 = vld [vmem:[%s1946_s8 + $0x38] sm:$0xff] }
 0x14c   : > { %1343 = vmatprep.mubr.bf16.mxu0 %v760_v25  ;;  %1351 = vmatprep.mubr.bf16.mxu1 %v764_v27  ;;  %v750_v44 = vld [vmem:[#allocation2 + $0x30] sm:$0xff] }
 0x14d   : > { %v748_v36 = vld [vmem:[#allocation2 + $0x20] sm:$0xff]  ;;  %v758_v46 = vld [vmem:[#allocation2 + $0x70] sm:$0xff] }
 0x14e   : > { %1334 = vmatpush3.bf16.msra.mxu0 %v1448_v21  ;;  %1386 = vmatpush3.bf16.msra.mxu1 %v1448_v21  ;;  %v756_v38 = vld [vmem:[#allocation2 + $0x60] sm:$0xff]  ;;  %v751_v45 = vld [vmem:[#allocation2 + $0x38] sm:$0xff] }
 0x14f   : > { %1335 = vmatprep.subr.bf16.mxu0 %v1449_v28  ;;  %1379 = vmatprep.subr.bf16.mxu1 %v1449_v28  ;;  %v749_v37 = vld [vmem:[#allocation2 + $0x28] sm:$0xff]  ;;  %v759_v47 = vld [vmem:[#allocation2 + $0x78] sm:$0xff]  ;;  %v763_v48 = vpack.c.bf16 %v751_v45, %v750_v44 }
 0x150   : > { %v757_v39 = vld [vmem:[#allocation2 + $0x68] sm:$0xff]  ;;  %v762_v42 = vpack.c.bf16 %v749_v37, %v748_v36  ;;  %v767_v49 = vpack.c.bf16 %v759_v47, %v758_v46 }
 0x151   : > { %v766_v43 = vpack.c.bf16 %v757_v39, %v756_v38  ;;  %v940_v37 = vld [vmem:[%s1946_s8 + $0x8] sm:$0xff] }
 0x152   : > { %1336 = vmatpush3.bf16.msra.mxu0 %v1449_v28  ;;  %1387 = vmatpush3.bf16.msra.mxu1 %v1449_v28  ;;  %v948_v38 = vld [vmem:[%s1946_s8 + $0x48] sm:$0xff] }
 0x153   : > { %1337 = vmatprep.subr.bf16.mxu0 %v1450_v29  ;;  %1380 = vmatprep.subr.bf16.mxu1 %v1450_v29 }
 0x156   : > { %1338 = vmatpush3.bf16.msra.mxu0 %v1450_v29  ;;  %1388 = vmatpush3.bf16.msra.mxu1 %v1450_v29 }
 0x157   : > { %1339 = vmatprep.subr.bf16.mxu0 %v1451_v30  ;;  %1381 = vmatprep.subr.bf16.mxu1 %v1451_v30 }
 0x15a   : > { %1340 = vmatpush3.bf16.msra.mxu0 %v1451_v30  ;;  %1389 = vmatpush3.bf16.msra.mxu1 %v1451_v30 }
 0x15b   : > { %1341 = vmatprep.subr.bf16.mxu0 %v1452_v31  ;;  %1382 = vmatprep.subr.bf16.mxu1 %v1452_v31 }
 0x15e   : > { %1342 = vmatpush3.bf16.msra.mxu0 %v1452_v31  ;;  %1390 = vmatpush3.bf16.msra.mxu1 %v1452_v31 }
 0x161   : > { %1344 = vmatmul.mubr.bf16.vlgmr.msra.gmra.mrb[0].mxu0 %v761_v40  ;;  %1352 = vmatmul.mubr.bf16.vlgmr.msra.gmra.mrb[0].mxu1 %v765_v41 }
 0x162   : > { %1347 = vmatprep.mubr.bf16.mxu0 %v762_v42  ;;  %1355 = vmatprep.mubr.bf16.mxu1 %v766_v43 }
 0x169   : > { %1348 = vmatmul.mubr.bf16.gmra.mrb[4].mxu0 %v763_v48  ;;  %1356 = vmatmul.mubr.bf16.gmra.mrb[4].mxu1 %v767_v49 }
 0x234   : > { %v1345_v57 = vpop.f32.mrb[0].mxu0  ;;  %v1353_v58 = vpop.f32.mrb[0].mxu1 }
 0x235   : > { %v885_v59 = vadd.f32 %v1345_v57, %v1737_v56  ;;  %v917_v60 = vadd.f32 %v1353_v58, %v1737_v56  ;;  %v876_v61 = vpop.f32.mrb[1].mxu0  ;;  %v908_v62 = vpop.f32.mrb[1].mxu1 }
 0x236   : > { %v877_v63 = vadd.f32 %v876_v61, %v1737_v56  ;;  %v909_v0 = vadd.f32 %v908_v62, %v1737_v56  ;;  %v1346_v1 = vpop.f32.mrb[2].mxu0  ;;  %v1354_v2 = vpop.f32.mrb[2].mxu1  ;;  %v943_v61 = vld [vmem:[%s1946_s8 + $0x20] sm:$0xff] }
 0x237   : > { %v957_v5 = vmax.f32 %v885_v59, 0.0  ;;  %v965_v6 = vmax.f32 %v917_v60, 0.0  ;;  %v888_v7 = vadd.f32 %v1346_v1, %v1737_v56  ;;  %v920_v8 = vadd.f32 %v1354_v2, %v1737_v56  ;;  %v879_v9 = vpop.f32.mrb[3].mxu0  ;;  %v911_v10 = vpop.f32.mrb[3].mxu1  ;;  %v944_v1 = vld [vmem:[%s1946_s8 + $0x28] sm:$0xff] }
 0x238   : > { %v955_v12 = vmax.f32 %v877_v63, 0.0  ;;  %v963_v18 = vmax.f32 %v909_v0, 0.0  ;;  %v880_v17 = vadd.f32 %v879_v9, %v1737_v56  ;;  %v912_v20 = vadd.f32 %v911_v10, %v1737_v56  ;;  %v951_v10 = vld [vmem:[%s1946_s8 + $0x60] sm:$0xff] }
 0x239   : > { %v958_v14 = vmax.f32 %v888_v7, 0.0  ;;  %v1757_v15 = vadd.f32 %v965_v6, %v949_v3  ;;  %v1759_v16 = vadd.f32 %v957_v5, %v941_v4  ;;  %v966_v19 = vmax.f32 %v920_v8, 0.0 }
 0x23a   : > { %v1763_v21 = vadd.f32 %v955_v12, %v939_v11  ;;  %v1777_v31 = vadd.f32 %v963_v18, %v947_v22  ;;  %v956_v33 = vmax.f32 %v880_v17, 0.0  ;;  %v964_v34 = vmax.f32 %v912_v20, 0.0  ;;  %v952_v11 = vld [vmem:[%s1946_s8 + $0x68] sm:$0xff]  ;;  %v953_v17 = vld [vmem:[%s1946_s8 + $0x70] sm:$0xff]  ;;  %v954_v20 = vld [vmem:[%s1946_s8 + $0x78] sm:$0xff] }
 0x23b   : > { %v1768_v23 = vadd.f32 %v958_v14, %v942_v13  ;;  %v997_v25 = vmul.f32 %v1757_v15, %v1757_v15  ;;  %v989_v26 = vmul.f32 %v1759_v16, %v1759_v16  ;;  %v1779_v32 = vadd.f32 %v966_v19, %v950_v24 }
 0x23c   : > { %v1349_v27 = vpop.f32.mrb[4].mxu0  ;;  %v1357_v28 = vpop.f32.mrb[4].mxu1  ;;  %v987_v42 = vmul.f32 %v1763_v21, %v1763_v21  ;;  %v1793_v45 = vadd.f32 %v956_v33, %v940_v37  ;;  %v1795_v46 = vadd.f32 %v964_v34, %v948_v38  ;;  %v995_v48 = vmul.f32 %v1777_v31, %v1777_v31 }
 0x23d   : > { %1023 = vadd.xlane.f32.xlu0 %v997_v25  ;;  %1007 = vadd.xlane.f32.xlu1 %v989_v26  ;;  %v892_v29 = vpop.f32.mrb[5].mxu0  ;;  %v924_v30 = vpop.f32.mrb[5].mxu1  ;;  %v901_v39 = vadd.f32 %v1349_v27, %v1737_v56  ;;  %v990_v40 = vmul.f32 %v1768_v23, %v1768_v23  ;;  %v998_v52 = vmul.f32 %v1779_v32, %v1779_v32 }
 0x23e   : > { %v1350_v35 = vpop.f32.mrb[6].mxu0  ;;  %v1358_v36 = vpop.f32.mrb[6].mxu1  ;;  %v893_v47 = vadd.f32 %v892_v29, %v1737_v56  ;;  %v925_v57 = vadd.f32 %v924_v30, %v1737_v56  ;;  %v996_v58 = vmul.f32 %v1795_v46, %v1795_v46  ;;  %v988_v59 = vmul.f32 %v1793_v45, %v1793_v45 }
 0x23f   : > { %v904_v41 = vadd.f32 %v1350_v35, %v1737_v56  ;;  %v895_v43 = vpop.f32.mrb[7].mxu0  ;;  %v927_v44 = vpop.f32.mrb[7].mxu1  ;;  %v961_v49 = vmax.f32 %v901_v39, 0.0  ;;  %v933_v3 = vadd.f32 %v1357_v28, %v1737_v56  ;;  %v936_v5 = vadd.f32 %v1358_v36, %v1737_v56 }
 0x240   : > { %v896_v51 = vadd.f32 %v895_v43, %v1737_v56  ;;  %v959_v55 = vmax.f32 %v893_v47, 0.0  ;;  %v928_v0 = vadd.f32 %v927_v44, %v1737_v56  ;;  %v967_v4 = vmax.f32 %v925_v57, 0.0 }
 0x241   : > { %1009 = vadd.xlane.f32.xlu1 %v990_v40  ;;  %1003 = vadd.xlane.f32.xlu0 %v987_v42  ;;  %v962_v50 = vmax.f32 %v904_v41, 0.0  ;;  %v1814_v60 = vadd.f32 %v961_v49, %v945_v53  ;;  %v969_v56 = vmax.f32 %v933_v3, 0.0  ;;  %v970_v12 = vmax.f32 %v936_v5, 0.0 }
 0x242   : > { %v960_v63 = vmax.f32 %v896_v51, 0.0  ;;  %v1825_v2 = vadd.f32 %v959_v55, %v943_v61  ;;  %v968_v7 = vmax.f32 %v928_v0, 0.0  ;;  %v1841_v13 = vadd.f32 %v967_v4, %v951_v10 }
 0x243   : > { %v1819_v62 = vadd.f32 %v962_v50, %v946_v54  ;;  %v993_v9 = vmul.f32 %v1814_v60, %v1814_v60  ;;  %v1855_v22 = vadd.f32 %v969_v56, %v953_v17  ;;  %v1857_v24 = vadd.f32 %v970_v12, %v954_v20 }
 0x244   : > { %v1829_v6 = vadd.f32 %v960_v63, %v944_v1  ;;  %v1843_v14 = vadd.f32 %v968_v7, %v952_v11  ;;  %v991_v19 = vmul.f32 %v1825_v2, %v1825_v2  ;;  %v999_v26 = vmul.f32 %v1841_v13, %v1841_v13 }
 0x245   : > { %1025 = vadd.xlane.f32.xlu1 %v998_v52  ;;  %1019 = vadd.xlane.f32.xlu0 %v995_v48  ;;  %v994_v8 = vmul.f32 %v1819_v62, %v1819_v62  ;;  %v1002_v27 = vmul.f32 %v1857_v24, %v1857_v24  ;;  %v1001_v28 = vmul.f32 %v1855_v22, %v1855_v22 }
 0x246   : > { %v992_v18 = vmul.f32 %v1829_v6, %v1829_v6  ;;  %v1000_v25 = vmul.f32 %v1843_v14, %v1843_v14 }
 0x249   : > { %1021 = vadd.xlane.f32.xlu1 %v996_v58  ;;  %1005 = vadd.xlane.f32.xlu0 %v988_v59 }
 0x24d   : > { %1017 = vadd.xlane.f32.xlu1 %v994_v8  ;;  %1015 = vadd.xlane.f32.xlu0 %v993_v9 }
 0x251   : > { %1013 = vadd.xlane.f32.xlu1 %v992_v18  ;;  %1011 = vadd.xlane.f32.xlu0 %v991_v19 }
 0x255   : > { %1029 = vadd.xlane.f32.xlu1 %v1000_v25  ;;  %1027 = vadd.xlane.f32.xlu0 %v999_v26 }
 0x259   : > { %1033 = vadd.xlane.f32.xlu1 %v1002_v27  ;;  %1031 = vadd.xlane.f32.xlu0 %v1001_v28 }
 0x2ca   : > { %v1024_v29 = vpop.xlane.xlu0 %1023  ;;  %v1008_v30 = vpop.xlane.xlu1 %1007 }
 0x2cb   : > { %v1045_v33 = vmax.f32 %v1024_v29, 1e-24  ;;  %v1037_v34 = vmax.f32 %v1008_v30, 1e-24 }
 0x2cd   : > { %1453 = vrsqrt.f32 %v1045_v33 }
 0x2ce   : > { %1455 = vrsqrt.f32 %v1037_v34  ;;  %v1010_v35 = vpop.xlane.xlu1 %1009  ;;  %v1004_v36 = vpop.xlane.xlu0 %1003 }
 0x2cf   : > { %v1038_v37 = vmax.f32 %v1010_v35, 1e-24  ;;  %v1035_v38 = vmax.f32 %v1004_v36, 1e-24 }
 0x2d1   : > { %1457 = vrsqrt.f32 %v1038_v37 }
 0x2d2   : > { %1459 = vrsqrt.f32 %v1035_v38  ;;  %v1026_v39 = vpop.xlane.xlu1 %1025  ;;  %v1020_v40 = vpop.xlane.xlu0 %1019 }
 0x2d3   : > { %v1046_v41 = vmax.f32 %v1026_v39, 1e-24  ;;  %v1043_v42 = vmax.f32 %v1020_v40, 1e-24 }
 0x2d5   : > { %1461 = vrsqrt.f32 %v1046_v41 }
 0x2d6   : > { %1463 = vrsqrt.f32 %v1043_v42  ;;  %v1022_v43 = vpop.xlane.xlu1 %1021  ;;  %v1006_v44 = vpop.xlane.xlu0 %1005 }
 0x2d7   : > { %v1454_v47 = vpop.eup %1453  ;;  %v1044_v48 = vmax.f32 %v1022_v43, 1e-24  ;;  %v1036_v49 = vmax.f32 %v1006_v44, 1e-24 }
 0x2d8   : > { %v1456_v50 = vpop.eup %1455  ;;  %v1077_v51 = vmul.f32 %v1454_v47, %v1757_v15 }
 0x2d9   : > { %v1069_v52 = vmul.f32 %v1456_v50, %v1759_v16  ;;  %1465 = vrsqrt.f32 %v1044_v48 }
 0x2da   : > { %1093 = vst [vmem:[%s1947_s9 + $0x50] sm:$0xff] %v1077_v51  ;;  %1467 = vrsqrt.f32 %v1036_v49  ;;  %v1018_v53 = vpop.xlane.xlu1 %1017  ;;  %v1016_v54 = vpop.xlane.xlu0 %1015 }
 0x2db   : > { %v1458_v55 = vpop.eup %1457  ;;  %1085 = vst [vmem:[%s1947_s9 + $0x10] sm:$0xff] %v1069_v52  ;;  %v1042_v57 = vmax.f32 %v1018_v53, 1e-24  ;;  %v1041_v58 = vmax.f32 %v1016_v54, 1e-24 }
 0x2dc   : > { %v1460_v59 = vpop.eup %1459  ;;  %v1070_v15 = vmul.f32 %v1458_v55, %v1768_v23 }
 0x2dd   : > { %v1067_v16 = vmul.f32 %v1460_v59, %v1763_v21  ;;  %1469 = vrsqrt.f32 %v1042_v57 }
 0x2de   : > { %1086 = vst [vmem:[%s1947_s9 + $0x18] sm:$0xff] %v1070_v15  ;;  %1471 = vrsqrt.f32 %v1041_v58  ;;  %v1014_v61 = vpop.xlane.xlu1 %1013  ;;  %v1012_v63 = vpop.xlane.xlu0 %1011 }
 0x2df   : > { %v1462_v0 = vpop.eup %1461  ;;  %1083 = vst [vmem:[%s1947_s9] sm:$0xff] %v1067_v16  ;;  %v1040_v1 = vmax.f32 %v1014_v61, 1e-24  ;;  %v1039_v3 = vmax.f32 %v1012_v63, 1e-24 }
 0x2e0   : > { %v1464_v4 = vpop.eup %1463  ;;  %v1078_v23 = vmul.f32 %v1462_v0, %v1779_v32 }
 0x2e1   : > { %v1075_v21 = vmul.f32 %v1464_v4, %v1777_v31  ;;  %1473 = vrsqrt.f32 %v1040_v1 }
 0x2e2   : > { %1094 = vst [vmem:[%s1947_s9 + $0x58] sm:$0xff] %v1078_v23  ;;  %1475 = vrsqrt.f32 %v1039_v3  ;;  %v1030_v5 = vpop.xlane.xlu1 %1029  ;;  %v1028_v7 = vpop.xlane.xlu0 %1027 }
 0x2e3   : > { %v1466_v8 = vpop.eup %1465  ;;  %1091 = vst [vmem:[%s1947_s9 + $0x40] sm:$0xff] %v1075_v21  ;;  %v1048_v9 = vmax.f32 %v1030_v5, 1e-24  ;;  %v1047_v10 = vmax.f32 %v1028_v7, 1e-24 }
 0x2e4   : > { %v1468_v11 = vpop.eup %1467  ;;  %v1076_v32 = vmul.f32 %v1466_v8, %v1795_v46 }
 0x2e5   : > { %v1068_v31 = vmul.f32 %v1468_v11, %v1793_v45  ;;  %1477 = vrsqrt.f32 %v1048_v9 }
 0x2e6   : > { %1092 = vst [vmem:[%s1947_s9 + $0x48] sm:$0xff] %v1076_v32  ;;  %1479 = vrsqrt.f32 %v1047_v10  ;;  %v1034_v56 = vpop.xlane.xlu1 %1033  ;;  %v1032_v12 = vpop.xlane.xlu0 %1031 }
 0x2e7   : > { %v1470_v18 = vpop.eup %1469  ;;  %1084 = vst [vmem:[%s1947_s9 + $0x8] sm:$0xff] %v1068_v31  ;;  %v1050_v19 = vmax.f32 %v1034_v56, 1e-24  ;;  %v1049_v17 = vmax.f32 %v1032_v12, 1e-24 }
 0x2e8   : > { %v1472_v20 = vpop.eup %1471  ;;  %v1074_v46 = vmul.f32 %v1470_v18, %v1819_v62 }
 0x2e9   : > { %v1073_v45 = vmul.f32 %v1472_v20, %v1814_v60  ;;  %1481 = vrsqrt.f32 %v1050_v19 }
 0x2ea   : > { %1090 = vst [vmem:[%s1947_s9 + $0x38] sm:$0xff] %v1074_v46  ;;  %1483 = vrsqrt.f32 %v1049_v17 }
 0x2eb   : > { %v1474_v25 = vpop.eup %1473  ;;  %1089 = vst [vmem:[%s1947_s9 + $0x30] sm:$0xff] %v1073_v45 }
 0x2ec   : > { %v1476_v26 = vpop.eup %1475  ;;  %v1072_v27 = vmul.f32 %v1474_v25, %v1829_v6 }
 0x2ed   : > { %v1071_v28 = vmul.f32 %v1476_v26, %v1825_v2 }
 0x2ee   : > { %1088 = vst [vmem:[%s1947_s9 + $0x28] sm:$0xff] %v1072_v27 }
 0x2ef   : > { %v1478_v60 = vpop.eup %1477  ;;  %1087 = vst [vmem:[%s1947_s9 + $0x20] sm:$0xff] %v1071_v28 }
 0x2f0   : > { %v1480_v62 = vpop.eup %1479  ;;  %v1080_v29 = vmul.f32 %v1478_v60, %v1843_v14 }
 0x2f1   : > { %v1079_v30 = vmul.f32 %v1480_v62, %v1841_v13 }
 0x2f2   : > { %1096 = vst [vmem:[%s1947_s9 + $0x68] sm:$0xff] %v1080_v29 }
 0x2f3   : > { %v1482_v6 = vpop.eup %1481  ;;  %1095 = vst [vmem:[%s1947_s9 + $0x60] sm:$0xff] %v1079_v30 }
 0x2f4   : > { %v1484_v2 = vpop.eup %1483  ;;  %v1082_v33 = vmul.f32 %v1482_v6, %v1857_v24 }
 0x2f5   : > { %v1081_v34 = vmul.f32 %v1484_v2, %v1855_v22 }
 0x2f6   : > { %1098 = vst [vmem:[%s1947_s9 + $0x78] sm:$0xff] %v1082_v33 }
 0x2f7   : > { %1097 = vst [vmem:[%s1947_s9 + $0x70] sm:$0xff] %v1081_v34 }
 0x2f8 PF: > { %s31_s21 = sadd.s32 1, %s1552_s21   ;;  %s1952_s19 = smov %s1548_s20 }
 0x2f9   : > { %p28_p0 = scmp.ge.s32.totalorder %s31_s21, 5   ;;  %s1953_s20 = smov %s1955_s22 }
 0x2fb   :  { %30 = sbr.rel (!%p28_p0) target bundleno = 27 (0x1b), region = 97 }
 0x302   :  { %1121 = vsyncpa [#allocation8], 1 }
 0x303   :  { %1123 = vsyncpa [#allocation8 + $0x1], 1 }

</bundles_post_ra>
